<compile_context>
chip_gen: v6e
topology: v6e:2x2x1
jax: 0.10.0
libtpu: 0.0.40
codegen_flags: <defaults>
</compile_context>

<pallas_src>
import functools

import jax
import jax.numpy as jnp
from jax import lax
from jax.experimental import pallas as pl
from jax.experimental.pallas import tpu as pltpu


# ----------------------------------------------------------------------------
# Fused Conv1D autoencoder kernel (enc1 -> enc2 -> dec1 -> dec2, one call)
# ----------------------------------------------------------------------------
def _fused_ae_kernel(x_ref, w1, b1, w2, b2, w3, b3, w4, b4, emb_ref, rec_ref):
    """One grid step processes TB batch rows, channels-last (NLC) in VMEM.

    x_ref:   (TB, L+8, C)  input, zero-padded by 4 on each side of L
    w*_ref:  (3, Cin, Cout)  conv taps t=-1,0,+1 ; b*_ref: (1, Cout)
    emb_ref: (TB, L, E)    encoder output (NLC)
    rec_ref: (TB, L, C)    reconstruction (NLC)

    Padding trick: the input carries a 4-wide zero halo.  Each k=3 conv layer
    consumes one halo element per side (output length shrinks by 2) and the
    remaining halo rows are re-zeroed with an iota mask, which reproduces
    PyTorch's per-layer zero padding exactly while using only value slices,
    matmuls and jnp.where (no in-kernel pad/concat/roll).
    """
    tb = x_ref.shape[0]
    L = emb_ref.shape[1]

    def conv3(a, w_ref, b_ref, relu, halo):
        # a: (tb, Nin, Cin) f32 value -> (tb, Nin-2, Cout) f32 value
        n_out = a.shape[1] - 2
        cin, cout = w_ref.shape[1], w_ref.shape[2]
        a16 = a.astype(jnp.bfloat16)                       # bf16 into the MXU
        acc = None
        for t in range(3):                                 # static, unrolled
            wt = jnp.broadcast_to(
                w_ref[t].astype(jnp.bfloat16)[None], (tb, cin, cout))
            part = lax.dot_general(                        # batched matmul
                a16[:, t:t + n_out, :], wt,
                dimension_numbers=(((2,), (1,)), ((0,), (0,))),
                preferred_element_type=jnp.float32)        # f32 accumulation
            acc = part if acc is None else acc + part
        acc = acc + b_ref[...].astype(jnp.float32)         # (1,Cout) broadcast
        if relu:
            acc = jnp.maximum(acc, 0.0)
        if halo:                                           # re-zero halo rows
            row = lax.broadcasted_iota(jnp.int32, (n_out, 1), 0)
            keep = (row >= halo) & (row < n_out - halo)
            acc = jnp.where(keep, acc, 0.0)
        return acc

    x = x_ref[...]                                         # (tb, L+8, C) f32
    h = conv3(x, w1, b1, True, 3)                          # (tb, L+6, 2E)
    e = conv3(h, w2, b2, True, 2)                          # (tb, L+4, E)
    emb_ref[...] = e[:, 2:2 + L, :].astype(emb_ref.dtype)  # central L rows
    d = conv3(e, w3, b3, True, 1)                          # (tb, L+2, 2E)
    r = conv3(d, w4, b4, False, 0)                         # (tb, L,   C)
    rec_ref[...] = r.astype(rec_ref.dtype)


# ----------------------------------------------------------------------------
# Tiled Pearson-correlation soft-assignment kernel
# ----------------------------------------------------------------------------
def _pcc_kernel(z_ref, cn_ref, o_ref, *, alpha, k_real):
    """z_ref: (TN, D) embeddings; cn_ref: (Kp, D) pre-normalized centroids
    (zero-padded rows beyond k_real); o_ref: (TN, Kp) softmax(alpha * PCC)."""
    z = z_ref[...].astype(jnp.float32)
    zc = z - jnp.mean(z, axis=-1, keepdims=True)
    zc = zc * lax.rsqrt(jnp.sum(zc * zc, axis=-1, keepdims=True) + 1e-8)
    pcc = lax.dot_general(zc, cn_ref[...], (((1,), (1,)), ((), ())),
                          preferred_element_type=jnp.float32)   # (TN, Kp)
    logits = alpha * pcc
    col = lax.broadcasted_iota(jnp.int32, logits.shape, 1)
    logits = jnp.where(col < k_real, logits, -1e30)          # mask padded K
    m = jnp.max(logits, axis=-1, keepdims=True)
    e = jnp.exp(logits - m)
    denom = jnp.sum(e, axis=-1, keepdims=True)
    o_ref[...] = (e * pl.reciprocal(denom, approx=True)).astype(o_ref.dtype)


# ----------------------------------------------------------------------------
# Block-size helpers (always pick a divisor -> no ragged blocks)
# ----------------------------------------------------------------------------
def _largest_divisor_leq(n, target):
    t = max(1, min(n, target))
    while n % t:
        t -= 1
    return t


def _pcc_row_block(n, target=256):
    if n <= target:
        return n                       # full dim -> block-shape rule satisfied
    for t in range(target, 7, -1):     # need multiple of 8 when t < n
        if t % 8 == 0 and n % t == 0:
            return t
    return n                           # rare fallback: single block


# ----------------------------------------------------------------------------
# pallas_call wrappers
# ----------------------------------------------------------------------------
def conv1d_ae_fused(params, FS_ncl):
    """FS_ncl: (N, C, L) -> (emb_nlc (N, L, E), recon_nlc (N, L, C))."""
    N, C, L = FS_ncl.shape
    E = params["enc2"][0].shape[2]
    x_nlc = jnp.transpose(FS_ncl, (0, 2, 1))                 # NCL -> NLC (once)
    x_pad = jnp.pad(x_nlc, ((0, 0), (4, 4), (0, 0)))         # one small pad
    Lp = L + 8
    tb = _largest_divisor_leq(N, min(64, max(1, 512 // max(L, 1))))

    w1, b1 = params["enc1"]
    w2, b2 = params["enc2"]
    w3, b3 = params["dec1"]
    w4, b4 = params["dec2"]

    const3 = lambda i: (0, 0, 0)
    const2 = lambda i: (0, 0)

    emb_nlc, rec_nlc = pl.pallas_call(
        _fused_ae_kernel,
        out_shape=(jax.ShapeDtypeStruct((N, L, E), jnp.float32),
                   jax.ShapeDtypeStruct((N, L, C), jnp.float32)),
        grid=(N // tb,),
        in_specs=[
            pl.BlockSpec((tb, Lp, C), lambda i: (i, 0, 0)),
            pl.BlockSpec(w1.shape, const3), pl.BlockSpec(b1.shape, const2),
            pl.BlockSpec(w2.shape, const3), pl.BlockSpec(b2.shape, const2),
            pl.BlockSpec(w3.shape, const3), pl.BlockSpec(b3.shape, const2),
            pl.BlockSpec(w4.shape, const3), pl.BlockSpec(b4.shape, const2),
        ],
        out_specs=[pl.BlockSpec((tb, L, E), lambda i: (i, 0, 0)),
                   pl.BlockSpec((tb, L, C), lambda i: (i, 0, 0))],
        compiler_params=pltpu.CompilerParams(
            dimension_semantics=("parallel",),
            vmem_limit_bytes=32 * 1024 * 1024),
    )(x_pad, w1, b1, w2, b2, w3, b3, w4, b4)
    return emb_nlc, rec_nlc


def pcc_soft_label(emb_flat, cent_norm_pad, k_real, *, alpha=1.0):
    """emb_flat: (N, D); cent_norm_pad: (Kp, D) normalized, zero-padded rows."""
    N, D = emb_flat.shape
    Kp = cent_norm_pad.shape[0]
    tn = _pcc_row_block(N)
    kern = functools.partial(_pcc_kernel, alpha=alpha, k_real=k_real)
    out = pl.pallas_call(
        kern,
        out_shape=jax.ShapeDtypeStruct((N, Kp), jnp.float32),
        grid=(N // tn,),
        in_specs=[pl.BlockSpec((tn, D), lambda i: (i, 0)),
                  pl.BlockSpec((Kp, D), lambda i: (0, 0))],   # centroids resident
        out_specs=pl.BlockSpec((tn, Kp), lambda i: (i, 0)),   # lane-dense (Kp=128k)
        compiler_params=pltpu.CompilerParams(
            dimension_semantics=("parallel",),
            vmem_limit_bytes=32 * 1024 * 1024),
    )(emb_flat, cent_norm_pad)
    return out[:, :k_real]


# ----------------------------------------------------------------------------
# CSA_FS model: parameter init + forward glue
# ----------------------------------------------------------------------------
def init_conv_params(key, cin, cout, scale=0.1):
    kw, kb = jax.random.split(key)
    # PyTorch Conv1d weight is (Cout, Cin, K); stored here as (K, Cin, Cout).
    w = scale * jax.random.normal(kw, (3, cin, cout), jnp.float32)
    b = scale * jax.random.normal(kb, (1, cout), jnp.float32)
    return w, b


def init_csa_fs_params(key, n_channels, emb_dim):
    hidden = 2 * emb_dim
    keys = jax.random.split(key, 4)
    return {
        "enc1": init_conv_params(keys[0], n_channels, hidden),
        "enc2": init_conv_params(keys[1], hidden, emb_dim),
        "dec1": init_conv_params(keys[2], emb_dim, hidden),
        "dec2": init_conv_params(keys[3], hidden, n_channels),
    }


def _prep_centroid_lmajor(centroid, E, L, k_pad=128):
    """(K, E*L) E-major -> normalized, L-major, row-padded (Kp, L*E).

    Pearson correlation is invariant to applying the SAME permutation to both
    vectors, so using the L-major flatten (matching the kernel's NLC emb) gives
    numbers identical to the PyTorch E-major flatten.
    """
    K = centroid.shape[0]
    c = centroid.reshape(K, E, L).transpose(0, 2, 1).reshape(K, L * E)
    c = c - c.mean(-1, keepdims=True)
    c = c / jnp.sqrt((c * c).sum(-1, keepdims=True) + 1e-8)
    Kp = ((K + k_pad - 1) // k_pad) * k_pad
    return jnp.pad(c, ((0, Kp - K), (0, 0))), K


def csa_fs_forward(params, FS_ncl, centroid, *, pretrained):
    """FS_ncl: (N, C, L); centroid: (K, emb_dim * L)."""
    N, C, L = FS_ncl.shape
    E = params["enc2"][0].shape[2]

    emb_nlc, recon_nlc = conv1d_ae_fused(params, FS_ncl)     # single fused call

    FS_emb = jnp.transpose(emb_nlc, (0, 2, 1))               # (N, E, L) output
    FS_recon = jnp.transpose(recon_nlc, (0, 2, 1))           # (N, C, L) output

    soft_label = None
    if pretrained:
        # TODO(synk): PCC_Layer source not provided; softmax over Pearson
        # correlations with alpha=1 assumed.
        emb_flat = emb_nlc.reshape(N, L * E)                 # free-ish reshape (no transpose)
        cent_norm, k_real = _prep_centroid_lmajor(centroid, E, L)
        soft_label = pcc_soft_label(emb_flat, cent_norm, k_real, alpha=1.0)

    return {"recon_ori": [(FS_recon, FS_ncl)], "pred": soft_label, "emb": FS_emb}


# ----------------------------------------------------------------------------
# Pure-JAX (f32) reference for validation
# ----------------------------------------------------------------------------
def conv1d_ref(x_nlc, w, b, relu):
    L = x_nlc.shape[1]
    xp = jnp.pad(x_nlc, ((0, 0), (1, 1), (0, 0)))
    y = sum(jnp.einsum("nlc,co->nlo", xp[:, t:t + L, :], w[t]) for t in range(3))
    y = y + b
    return jnp.maximum(y, 0.0) if relu else y


def csa_fs_ref(params, FS_ncl, centroid, *, pretrained):
    x = jnp.transpose(FS_ncl, (0, 2, 1))
    h = conv1d_ref(x, *params["enc1"], True)
    emb_nlc = conv1d_ref(h, *params["enc2"], True)
    d = conv1d_ref(emb_nlc, *params["dec1"], True)
    recon_nlc = conv1d_ref(d, *params["dec2"], False)
    FS_emb = jnp.transpose(emb_nlc, (0, 2, 1))
    FS_recon = jnp.transpose(recon_nlc, (0, 2, 1))
    soft_label = None
    if pretrained:
        z = FS_emb.reshape(FS_emb.shape[0], -1)              # E-major flatten
        zc = z - z.mean(-1, keepdims=True)
        cc = centroid - centroid.mean(-1, keepdims=True)
        zc = zc / jnp.sqrt((zc * zc).sum(-1, keepdims=True) + 1e-8)
        cc = cc / jnp.sqrt((cc * cc).sum(-1, keepdims=True) + 1e-8)
        soft_label = jax.nn.softmax(zc @ cc.T, axis=-1)
    return FS_recon, FS_emb, soft_label


# ----------------------------------------------------------------------------
if __name__ == "__main__":
    N, C, L = 2, 4, 16          # batch, n_channels, sequence length
    EMB = 8                     # FS_emb_dim
    K = 3                       # number of centroids

    root = jax.random.PRNGKey(0)
    k_fs, k_cent, k_params = jax.random.split(root, 3)

    FS = jax.random.normal(k_fs, (N, C, L), jnp.float32)
    centroid = jax.random.normal(k_cent, (K, EMB * L), jnp.float32)
    params = init_csa_fs_params(k_params, C, EMB)

    forward = jax.jit(csa_fs_forward, static_argnames=("pretrained",))
    out = forward(params, FS, centroid, pretrained=True)
    jax.block_until_ready(out["emb"])
    jax.block_until_ready(out["pred"])
    jax.block_until_ready(out["recon_ori"][0][0])

    recon_ref, emb_ref, pred_ref = csa_fs_ref(params, FS, centroid, pretrained=True)
    assert out["recon_ori"][0][0].shape == (N, C, L)
    assert out["emb"].shape == (N, EMB, L)
    assert out["pred"].shape == (N, K)
    # bf16 MXU inputs (f32 accumulation) + approx reciprocal -> loose-ish tol.
    assert jnp.allclose(out["recon_ori"][0][0], recon_ref, atol=1e-2, rtol=1e-2)
    assert jnp.allclose(out["emb"], emb_ref, atol=1e-2, rtol=1e-2)
    assert jnp.allclose(out["pred"], pred_ref, atol=1e-2, rtol=1e-2)
    assert jnp.allclose(out["recon_ori"][0][1], FS)

    print("KERNEL_OK")
</pallas_src>

<mosaic_0001>
module attributes {stable_mosaic.version = 11 : i64} {
  func.func @_fused_ae_kernel(%arg0: i32, %arg1: memref<2x24x4xf32, #tpu.memory_space<vmem>>, %arg2: memref<3x4x16xf32, #tpu.memory_space<vmem>>, %arg3: memref<1x16xf32, #tpu.memory_space<vmem>>, %arg4: memref<3x16x8xf32, #tpu.memory_space<vmem>>, %arg5: memref<1x8xf32, #tpu.memory_space<vmem>>, %arg6: memref<3x8x16xf32, #tpu.memory_space<vmem>>, %arg7: memref<1x16xf32, #tpu.memory_space<vmem>>, %arg8: memref<3x16x4xf32, #tpu.memory_space<vmem>>, %arg9: memref<1x4xf32, #tpu.memory_space<vmem>>, %arg10: memref<2x16x8xf32, #tpu.memory_space<vmem>>, %arg11: memref<2x16x4xf32, #tpu.memory_space<vmem>>) attributes {dimension_semantics = [#tpu.dimension_semantics<parallel>], iteration_bounds = array<i64: 1>, scalar_prefetch = 0 : i64, scratch_operands = 0 : i64, tpu.core_type = #tpu.core_type<tc>, window_params = [{transform_indices = @transform_0, window_bounds = array<i64: 2, 24, 4>}, {pipeline_mode = #tpu.pipeline_mode<synchronous>, transform_indices = @transform_1, window_bounds = array<i64: 3, 4, 16>}, {pipeline_mode = #tpu.pipeline_mode<synchronous>, transform_indices = @transform_2, window_bounds = array<i64: 1, 16>}, {pipeline_mode = #tpu.pipeline_mode<synchronous>, transform_indices = @transform_3, window_bounds = array<i64: 3, 16, 8>}, {pipeline_mode = #tpu.pipeline_mode<synchronous>, transform_indices = @transform_4, window_bounds = array<i64: 1, 8>}, {pipeline_mode = #tpu.pipeline_mode<synchronous>, transform_indices = @transform_5, window_bounds = array<i64: 3, 8, 16>}, {pipeline_mode = #tpu.pipeline_mode<synchronous>, transform_indices = @transform_6, window_bounds = array<i64: 1, 16>}, {pipeline_mode = #tpu.pipeline_mode<synchronous>, transform_indices = @transform_7, window_bounds = array<i64: 3, 16, 4>}, {pipeline_mode = #tpu.pipeline_mode<synchronous>, transform_indices = @transform_8, window_bounds = array<i64: 1, 4>}, {transform_indices = @transform_9, window_bounds = array<i64: 2, 16, 8>}, {transform_indices = @transform_10, window_bounds = array<i64: 2, 16, 4>}]} {
    %c0 = arith.constant 0 : index
    %c0_0 = arith.constant 0 : index
    %c0_1 = arith.constant 0 : index
    %0 = vector.load %arg1[%c0, %c0_0, %c0_1] : memref<2x24x4xf32, #tpu.memory_space<vmem>>, vector<2x24x4xf32>
    %1 = arith.truncf %0 : vector<2x24x4xf32> to vector<2x24x4xbf16>
    %c0_2 = arith.constant 0 : index
    %c0_3 = arith.constant 0 : index
    %c0_4 = arith.constant 0 : index
    %2 = vector.load %arg2[%c0_2, %c0_3, %c0_4] : memref<3x4x16xf32, #tpu.memory_space<vmem>>, vector<1x4x16xf32>
    %3 = vector.shape_cast %2 : vector<1x4x16xf32> to vector<4x16xf32>
    %4 = arith.truncf %3 : vector<4x16xf32> to vector<4x16xbf16>
    %5 = vector.shape_cast %4 : vector<4x16xbf16> to vector<1x4x16xbf16>
    %6 = vector.shape_cast %5 : vector<1x4x16xbf16> to vector<1x4x16xbf16>
    %7 = vector.broadcast %6 : vector<1x4x16xbf16> to vector<2x4x16xbf16>
    %8 = vector.extract_strided_slice %1 {offsets = [0, 0, 0], sizes = [2, 22, 4], strides = [1, 1, 1]} : vector<2x24x4xbf16> to vector<2x22x4xbf16>
    %cst = arith.constant dense<0.000000e+00> : vector<2x22x16xf32>
    %9 = tpu.matmul %8, %7, %cst {dimension_numbers = #tpu.dot_dimension_numbers<[2], [1], [1], [2], [0, 0, 0, 1, 1, 2], [0], [0]>} : vector<2x22x4xbf16>, vector<2x4x16xbf16>, vector<2x22x16xf32> -> vector<2x22x16xf32>
    %c1 = arith.constant 1 : index
    %c0_5 = arith.constant 0 : index
    %c0_6 = arith.constant 0 : index
    %10 = vector.load %arg2[%c1, %c0_5, %c0_6] : memref<3x4x16xf32, #tpu.memory_space<vmem>>, vector<1x4x16xf32>
    %11 = vector.shape_cast %10 : vector<1x4x16xf32> to vector<4x16xf32>
    %12 = arith.truncf %11 : vector<4x16xf32> to vector<4x16xbf16>
    %13 = vector.shape_cast %12 : vector<4x16xbf16> to vector<1x4x16xbf16>
    %14 = vector.shape_cast %13 : vector<1x4x16xbf16> to vector<1x4x16xbf16>
    %15 = vector.broadcast %14 : vector<1x4x16xbf16> to vector<2x4x16xbf16>
    %16 = vector.extract_strided_slice %1 {offsets = [0, 1, 0], sizes = [2, 22, 4], strides = [1, 1, 1]} : vector<2x24x4xbf16> to vector<2x22x4xbf16>
    %cst_7 = arith.constant dense<0.000000e+00> : vector<2x22x16xf32>
    %17 = tpu.matmul %16, %15, %cst_7 {dimension_numbers = #tpu.dot_dimension_numbers<[2], [1], [1], [2], [0, 0, 0, 1, 1, 2], [0], [0]>} : vector<2x22x4xbf16>, vector<2x4x16xbf16>, vector<2x22x16xf32> -> vector<2x22x16xf32>
    %18 = arith.addf %9, %17 : vector<2x22x16xf32>
    %c2 = arith.constant 2 : index
    %c0_8 = arith.constant 0 : index
    %c0_9 = arith.constant 0 : index
    %19 = vector.load %arg2[%c2, %c0_8, %c0_9] : memref<3x4x16xf32, #tpu.memory_space<vmem>>, vector<1x4x16xf32>
    %20 = vector.shape_cast %19 : vector<1x4x16xf32> to vector<4x16xf32>
    %21 = arith.truncf %20 : vector<4x16xf32> to vector<4x16xbf16>
    %22 = vector.shape_cast %21 : vector<4x16xbf16> to vector<1x4x16xbf16>
    %23 = vector.shape_cast %22 : vector<1x4x16xbf16> to vector<1x4x16xbf16>
    %24 = vector.broadcast %23 : vector<1x4x16xbf16> to vector<2x4x16xbf16>
    %25 = vector.extract_strided_slice %1 {offsets = [0, 2, 0], sizes = [2, 22, 4], strides = [1, 1, 1]} : vector<2x24x4xbf16> to vector<2x22x4xbf16>
    %cst_10 = arith.constant dense<0.000000e+00> : vector<2x22x16xf32>
    %26 = tpu.matmul %25, %24, %cst_10 {dimension_numbers = #tpu.dot_dimension_numbers<[2], [1], [1], [2], [0, 0, 0, 1, 1, 2], [0], [0]>} : vector<2x22x4xbf16>, vector<2x4x16xbf16>, vector<2x22x16xf32> -> vector<2x22x16xf32>
    %27 = arith.addf %18, %26 : vector<2x22x16xf32>
    %c0_11 = arith.constant 0 : index
    %c0_12 = arith.constant 0 : index
    %28 = vector.load %arg3[%c0_11, %c0_12] : memref<1x16xf32, #tpu.memory_space<vmem>>, vector<1x16xf32>
    %29 = vector.shape_cast %28 : vector<1x16xf32> to vector<1x1x16xf32>
    %30 = vector.broadcast %29 : vector<1x1x16xf32> to vector<2x22x16xf32>
    %31 = arith.addf %27, %30 : vector<2x22x16xf32>
    %cst_13 = arith.constant 0.000000e+00 : f32
    %32 = vector.broadcast %cst_13 : f32 to vector<2x22x16xf32>
    %33 = arith.maximumf %31, %32 : vector<2x22x16xf32>
    %34 = tpu.iota {dimensions = array<i32: 0>} : vector<22x1xi32>
    %c3_i32 = arith.constant 3 : i32
    %35 = vector.broadcast %c3_i32 : i32 to vector<22x1xi32>
    %36 = arith.cmpi sge, %34, %35 : vector<22x1xi32>
    %c19_i32 = arith.constant 19 : i32
    %37 = vector.broadcast %c19_i32 : i32 to vector<22x1xi32>
    %38 = arith.cmpi slt, %34, %37 : vector<22x1xi32>
    %39 = arith.andi %36, %38 : vector<22x1xi1>
    %cst_14 = arith.constant 0.000000e+00 : f32
    %40 = vector.shape_cast %39 : vector<22x1xi1> to vector<1x22x1xi1>
    %41 = vector.broadcast %40 : vector<1x22x1xi1> to vector<2x22x16xi1>
    %42 = vector.broadcast %cst_14 : f32 to vector<2x22x16xf32>
    %43 = arith.select %41, %33, %42 : vector<2x22x16xi1>, vector<2x22x16xf32>
    %44 = arith.truncf %43 : vector<2x22x16xf32> to vector<2x22x16xbf16>
    %c0_15 = arith.constant 0 : index
    %c0_16 = arith.constant 0 : index
    %c0_17 = arith.constant 0 : index
    %45 = vector.load %arg4[%c0_15, %c0_16, %c0_17] : memref<3x16x8xf32, #tpu.memory_space<vmem>>, vector<1x16x8xf32>
    %46 = vector.shape_cast %45 : vector<1x16x8xf32> to vector<16x8xf32>
    %47 = arith.truncf %46 : vector<16x8xf32> to vector<16x8xbf16>
    %48 = vector.shape_cast %47 : vector<16x8xbf16> to vector<1x16x8xbf16>
    %49 = vector.shape_cast %48 : vector<1x16x8xbf16> to vector<1x16x8xbf16>
    %50 = vector.broadcast %49 : vector<1x16x8xbf16> to vector<2x16x8xbf16>
    %51 = vector.extract_strided_slice %44 {offsets = [0, 0, 0], sizes = [2, 20, 16], strides = [1, 1, 1]} : vector<2x22x16xbf16> to vector<2x20x16xbf16>
    %cst_18 = arith.constant dense<0.000000e+00> : vector<2x20x8xf32>
    %52 = tpu.matmul %51, %50, %cst_18 {dimension_numbers = #tpu.dot_dimension_numbers<[2], [1], [1], [2], [0, 0, 0, 1, 1, 2], [0], [0]>} : vector<2x20x16xbf16>, vector<2x16x8xbf16>, vector<2x20x8xf32> -> vector<2x20x8xf32>
    %c1_19 = arith.constant 1 : index
    %c0_20 = arith.constant 0 : index
    %c0_21 = arith.constant 0 : index
    %53 = vector.load %arg4[%c1_19, %c0_20, %c0_21] : memref<3x16x8xf32, #tpu.memory_space<vmem>>, vector<1x16x8xf32>
    %54 = vector.shape_cast %53 : vector<1x16x8xf32> to vector<16x8xf32>
    %55 = arith.truncf %54 : vector<16x8xf32> to vector<16x8xbf16>
    %56 = vector.shape_cast %55 : vector<16x8xbf16> to vector<1x16x8xbf16>
    %57 = vector.shape_cast %56 : vector<1x16x8xbf16> to vector<1x16x8xbf16>
    %58 = vector.broadcast %57 : vector<1x16x8xbf16> to vector<2x16x8xbf16>
    %59 = vector.extract_strided_slice %44 {offsets = [0, 1, 0], sizes = [2, 20, 16], strides = [1, 1, 1]} : vector<2x22x16xbf16> to vector<2x20x16xbf16>
    %cst_22 = arith.constant dense<0.000000e+00> : vector<2x20x8xf32>
    %60 = tpu.matmul %59, %58, %cst_22 {dimension_numbers = #tpu.dot_dimension_numbers<[2], [1], [1], [2], [0, 0, 0, 1, 1, 2], [0], [0]>} : vector<2x20x16xbf16>, vector<2x16x8xbf16>, vector<2x20x8xf32> -> vector<2x20x8xf32>
    %61 = arith.addf %52, %60 : vector<2x20x8xf32>
    %c2_23 = arith.constant 2 : index
    %c0_24 = arith.constant 0 : index
    %c0_25 = arith.constant 0 : index
    %62 = vector.load %arg4[%c2_23, %c0_24, %c0_25] : memref<3x16x8xf32, #tpu.memory_space<vmem>>, vector<1x16x8xf32>
    %63 = vector.shape_cast %62 : vector<1x16x8xf32> to vector<16x8xf32>
    %64 = arith.truncf %63 : vector<16x8xf32> to vector<16x8xbf16>
    %65 = vector.shape_cast %64 : vector<16x8xbf16> to vector<1x16x8xbf16>
    %66 = vector.shape_cast %65 : vector<1x16x8xbf16> to vector<1x16x8xbf16>
    %67 = vector.broadcast %66 : vector<1x16x8xbf16> to vector<2x16x8xbf16>
    %68 = vector.extract_strided_slice %44 {offsets = [0, 2, 0], sizes = [2, 20, 16], strides = [1, 1, 1]} : vector<2x22x16xbf16> to vector<2x20x16xbf16>
    %cst_26 = arith.constant dense<0.000000e+00> : vector<2x20x8xf32>
    %69 = tpu.matmul %68, %67, %cst_26 {dimension_numbers = #tpu.dot_dimension_numbers<[2], [1], [1], [2], [0, 0, 0, 1, 1, 2], [0], [0]>} : vector<2x20x16xbf16>, vector<2x16x8xbf16>, vector<2x20x8xf32> -> vector<2x20x8xf32>
    %70 = arith.addf %61, %69 : vector<2x20x8xf32>
    %c0_27 = arith.constant 0 : index
    %c0_28 = arith.constant 0 : index
    %71 = vector.load %arg5[%c0_27, %c0_28] : memref<1x8xf32, #tpu.memory_space<vmem>>, vector<1x8xf32>
    %72 = vector.shape_cast %71 : vector<1x8xf32> to vector<1x1x8xf32>
    %73 = vector.broadcast %72 : vector<1x1x8xf32> to vector<2x20x8xf32>
    %74 = arith.addf %70, %73 : vector<2x20x8xf32>
    %cst_29 = arith.constant 0.000000e+00 : f32
    %75 = vector.broadcast %cst_29 : f32 to vector<2x20x8xf32>
    %76 = arith.maximumf %74, %75 : vector<2x20x8xf32>
    %77 = tpu.iota {dimensions = array<i32: 0>} : vector<20x1xi32>
    %c2_i32 = arith.constant 2 : i32
    %78 = vector.broadcast %c2_i32 : i32 to vector<20x1xi32>
    %79 = arith.cmpi sge, %77, %78 : vector<20x1xi32>
    %c18_i32 = arith.constant 18 : i32
    %80 = vector.broadcast %c18_i32 : i32 to vector<20x1xi32>
    %81 = arith.cmpi slt, %77, %80 : vector<20x1xi32>
    %82 = arith.andi %79, %81 : vector<20x1xi1>
    %cst_30 = arith.constant 0.000000e+00 : f32
    %83 = vector.shape_cast %82 : vector<20x1xi1> to vector<1x20x1xi1>
    %84 = vector.broadcast %83 : vector<1x20x1xi1> to vector<2x20x8xi1>
    %85 = vector.broadcast %cst_30 : f32 to vector<2x20x8xf32>
    %86 = arith.select %84, %76, %85 : vector<2x20x8xi1>, vector<2x20x8xf32>
    %87 = vector.extract_strided_slice %86 {offsets = [0, 2, 0], sizes = [2, 16, 8], strides = [1, 1, 1]} : vector<2x20x8xf32> to vector<2x16x8xf32>
    %c0_31 = arith.constant 0 : index
    %c0_32 = arith.constant 0 : index
    %c0_33 = arith.constant 0 : index
    %88 = vector.load %arg10[%c0_31, %c0_32, %c0_33] : memref<2x16x8xf32, #tpu.memory_space<vmem>>, vector<2x16x8xf32>
    tpu.vector_store %arg10[%c0_31, %c0_32, %c0_33], %87 {strides = array<i32>} : memref<2x16x8xf32, #tpu.memory_space<vmem>>, vector<2x16x8xf32>,
    %89 = arith.truncf %86 : vector<2x20x8xf32> to vector<2x20x8xbf16>
    %c0_34 = arith.constant 0 : index
    %c0_35 = arith.constant 0 : index
    %c0_36 = arith.constant 0 : index
    %90 = vector.load %arg6[%c0_34, %c0_35, %c0_36] : memref<3x8x16xf32, #tpu.memory_space<vmem>>, vector<1x8x16xf32>
    %91 = vector.shape_cast %90 : vector<1x8x16xf32> to vector<8x16xf32>
    %92 = arith.truncf %91 : vector<8x16xf32> to vector<8x16xbf16>
    %93 = vector.shape_cast %92 : vector<8x16xbf16> to vector<1x8x16xbf16>
    %94 = vector.shape_cast %93 : vector<1x8x16xbf16> to vector<1x8x16xbf16>
    %95 = vector.broadcast %94 : vector<1x8x16xbf16> to vector<2x8x16xbf16>
    %96 = vector.extract_strided_slice %89 {offsets = [0, 0, 0], sizes = [2, 18, 8], strides = [1, 1, 1]} : vector<2x20x8xbf16> to vector<2x18x8xbf16>
    %cst_37 = arith.constant dense<0.000000e+00> : vector<2x18x16xf32>
    %97 = tpu.matmul %96, %95, %cst_37 {dimension_numbers = #tpu.dot_dimension_numbers<[2], [1], [1], [2], [0, 0, 0, 1, 1, 2], [0], [0]>} : vector<2x18x8xbf16>, vector<2x8x16xbf16>, vector<2x18x16xf32> -> vector<2x18x16xf32>
    %c1_38 = arith.constant 1 : index
    %c0_39 = arith.constant 0 : index
    %c0_40 = arith.constant 0 : index
    %98 = vector.load %arg6[%c1_38, %c0_39, %c0_40] : memref<3x8x16xf32, #tpu.memory_space<vmem>>, vector<1x8x16xf32>
    %99 = vector.shape_cast %98 : vector<1x8x16xf32> to vector<8x16xf32>
    %100 = arith.truncf %99 : vector<8x16xf32> to vector<8x16xbf16>
    %101 = vector.shape_cast %100 : vector<8x16xbf16> to vector<1x8x16xbf16>
    %102 = vector.shape_cast %101 : vector<1x8x16xbf16> to vector<1x8x16xbf16>
    %103 = vector.broadcast %102 : vector<1x8x16xbf16> to vector<2x8x16xbf16>
    %104 = vector.extract_strided_slice %89 {offsets = [0, 1, 0], sizes = [2, 18, 8], strides = [1, 1, 1]} : vector<2x20x8xbf16> to vector<2x18x8xbf16>
    %cst_41 = arith.constant dense<0.000000e+00> : vector<2x18x16xf32>
    %105 = tpu.matmul %104, %103, %cst_41 {dimension_numbers = #tpu.dot_dimension_numbers<[2], [1], [1], [2], [0, 0, 0, 1, 1, 2], [0], [0]>} : vector<2x18x8xbf16>, vector<2x8x16xbf16>, vector<2x18x16xf32> -> vector<2x18x16xf32>
    %106 = arith.addf %97, %105 : vector<2x18x16xf32>
    %c2_42 = arith.constant 2 : index
    %c0_43 = arith.constant 0 : index
    %c0_44 = arith.constant 0 : index
    %107 = vector.load %arg6[%c2_42, %c0_43, %c0_44] : memref<3x8x16xf32, #tpu.memory_space<vmem>>, vector<1x8x16xf32>
    %108 = vector.shape_cast %107 : vector<1x8x16xf32> to vector<8x16xf32>
    %109 = arith.truncf %108 : vector<8x16xf32> to vector<8x16xbf16>
    %110 = vector.shape_cast %109 : vector<8x16xbf16> to vector<1x8x16xbf16>
    %111 = vector.shape_cast %110 : vector<1x8x16xbf16> to vector<1x8x16xbf16>
    %112 = vector.broadcast %111 : vector<1x8x16xbf16> to vector<2x8x16xbf16>
    %113 = vector.extract_strided_slice %89 {offsets = [0, 2, 0], sizes = [2, 18, 8], strides = [1, 1, 1]} : vector<2x20x8xbf16> to vector<2x18x8xbf16>
    %cst_45 = arith.constant dense<0.000000e+00> : vector<2x18x16xf32>
    %114 = tpu.matmul %113, %112, %cst_45 {dimension_numbers = #tpu.dot_dimension_numbers<[2], [1], [1], [2], [0, 0, 0, 1, 1, 2], [0], [0]>} : vector<2x18x8xbf16>, vector<2x8x16xbf16>, vector<2x18x16xf32> -> vector<2x18x16xf32>
    %115 = arith.addf %106, %114 : vector<2x18x16xf32>
    %c0_46 = arith.constant 0 : index
    %c0_47 = arith.constant 0 : index
    %116 = vector.load %arg7[%c0_46, %c0_47] : memref<1x16xf32, #tpu.memory_space<vmem>>, vector<1x16xf32>
    %117 = vector.shape_cast %116 : vector<1x16xf32> to vector<1x1x16xf32>
    %118 = vector.broadcast %117 : vector<1x1x16xf32> to vector<2x18x16xf32>
    %119 = arith.addf %115, %118 : vector<2x18x16xf32>
    %cst_48 = arith.constant 0.000000e+00 : f32
    %120 = vector.broadcast %cst_48 : f32 to vector<2x18x16xf32>
    %121 = arith.maximumf %119, %120 : vector<2x18x16xf32>
    %122 = tpu.iota {dimensions = array<i32: 0>} : vector<18x1xi32>
    %c1_i32 = arith.constant 1 : i32
    %123 = vector.broadcast %c1_i32 : i32 to vector<18x1xi32>
    %124 = arith.cmpi sge, %122, %123 : vector<18x1xi32>
    %c17_i32 = arith.constant 17 : i32
    %125 = vector.broadcast %c17_i32 : i32 to vector<18x1xi32>
    %126 = arith.cmpi slt, %122, %125 : vector<18x1xi32>
    %127 = arith.andi %124, %126 : vector<18x1xi1>
    %cst_49 = arith.constant 0.000000e+00 : f32
    %128 = vector.shape_cast %127 : vector<18x1xi1> to vector<1x18x1xi1>
    %129 = vector.broadcast %128 : vector<1x18x1xi1> to vector<2x18x16xi1>
    %130 = vector.broadcast %cst_49 : f32 to vector<2x18x16xf32>
    %131 = arith.select %129, %121, %130 : vector<2x18x16xi1>, vector<2x18x16xf32>
    %132 = arith.truncf %131 : vector<2x18x16xf32> to vector<2x18x16xbf16>
    %c0_50 = arith.constant 0 : index
    %c0_51 = arith.constant 0 : index
    %c0_52 = arith.constant 0 : index
    %133 = vector.load %arg8[%c0_50, %c0_51, %c0_52] : memref<3x16x4xf32, #tpu.memory_space<vmem>>, vector<1x16x4xf32>
    %134 = vector.shape_cast %133 : vector<1x16x4xf32> to vector<16x4xf32>
    %135 = arith.truncf %134 : vector<16x4xf32> to vector<16x4xbf16>
    %136 = vector.shape_cast %135 : vector<16x4xbf16> to vector<1x16x4xbf16>
    %137 = vector.shape_cast %136 : vector<1x16x4xbf16> to vector<1x16x4xbf16>
    %138 = vector.broadcast %137 : vector<1x16x4xbf16> to vector<2x16x4xbf16>
    %139 = vector.extract_strided_slice %132 {offsets = [0, 0, 0], sizes = [2, 16, 16], strides = [1, 1, 1]} : vector<2x18x16xbf16> to vector<2x16x16xbf16>
    %cst_53 = arith.constant dense<0.000000e+00> : vector<2x16x4xf32>
    %140 = tpu.matmul %139, %138, %cst_53 {dimension_numbers = #tpu.dot_dimension_numbers<[2], [1], [1], [2], [0, 0, 0, 1, 1, 2], [0], [0]>} : vector<2x16x16xbf16>, vector<2x16x4xbf16>, vector<2x16x4xf32> -> vector<2x16x4xf32>
    %c1_54 = arith.constant 1 : index
    %c0_55 = arith.constant 0 : index
    %c0_56 = arith.constant 0 : index
    %141 = vector.load %arg8[%c1_54, %c0_55, %c0_56] : memref<3x16x4xf32, #tpu.memory_space<vmem>>, vector<1x16x4xf32>
    %142 = vector.shape_cast %141 : vector<1x16x4xf32> to vector<16x4xf32>
    %143 = arith.truncf %142 : vector<16x4xf32> to vector<16x4xbf16>
    %144 = vector.shape_cast %143 : vector<16x4xbf16> to vector<1x16x4xbf16>
    %145 = vector.shape_cast %144 : vector<1x16x4xbf16> to vector<1x16x4xbf16>
    %146 = vector.broadcast %145 : vector<1x16x4xbf16> to vector<2x16x4xbf16>
    %147 = vector.extract_strided_slice %132 {offsets = [0, 1, 0], sizes = [2, 16, 16], strides = [1, 1, 1]} : vector<2x18x16xbf16> to vector<2x16x16xbf16>
    %cst_57 = arith.constant dense<0.000000e+00> : vector<2x16x4xf32>
    %148 = tpu.matmul %147, %146, %cst_57 {dimension_numbers = #tpu.dot_dimension_numbers<[2], [1], [1], [2], [0, 0, 0, 1, 1, 2], [0], [0]>} : vector<2x16x16xbf16>, vector<2x16x4xbf16>, vector<2x16x4xf32> -> vector<2x16x4xf32>
    %149 = arith.addf %140, %148 : vector<2x16x4xf32>
    %c2_58 = arith.constant 2 : index
    %c0_59 = arith.constant 0 : index
    %c0_60 = arith.constant 0 : index
    %150 = vector.load %arg8[%c2_58, %c0_59, %c0_60] : memref<3x16x4xf32, #tpu.memory_space<vmem>>, vector<1x16x4xf32>
    %151 = vector.shape_cast %150 : vector<1x16x4xf32> to vector<16x4xf32>
    %152 = arith.truncf %151 : vector<16x4xf32> to vector<16x4xbf16>
    %153 = vector.shape_cast %152 : vector<16x4xbf16> to vector<1x16x4xbf16>
    %154 = vector.shape_cast %153 : vector<1x16x4xbf16> to vector<1x16x4xbf16>
    %155 = vector.broadcast %154 : vector<1x16x4xbf16> to vector<2x16x4xbf16>
    %156 = vector.extract_strided_slice %132 {offsets = [0, 2, 0], sizes = [2, 16, 16], strides = [1, 1, 1]} : vector<2x18x16xbf16> to vector<2x16x16xbf16>
    %cst_61 = arith.constant dense<0.000000e+00> : vector<2x16x4xf32>
    %157 = tpu.matmul %156, %155, %cst_61 {dimension_numbers = #tpu.dot_dimension_numbers<[2], [1], [1], [2], [0, 0, 0, 1, 1, 2], [0], [0]>} : vector<2x16x16xbf16>, vector<2x16x4xbf16>, vector<2x16x4xf32> -> vector<2x16x4xf32>
    %158 = arith.addf %149, %157 : vector<2x16x4xf32>
    %c0_62 = arith.constant 0 : index
    %c0_63 = arith.constant 0 : index
    %159 = vector.load %arg9[%c0_62, %c0_63] : memref<1x4xf32, #tpu.memory_space<vmem>>, vector<1x4xf32>
    %160 = vector.shape_cast %159 : vector<1x4xf32> to vector<1x1x4xf32>
    %161 = vector.broadcast %160 : vector<1x1x4xf32> to vector<2x16x4xf32>
    %162 = arith.addf %158, %161 : vector<2x16x4xf32>
    %c0_64 = arith.constant 0 : index
    %c0_65 = arith.constant 0 : index
    %c0_66 = arith.constant 0 : index
    %163 = vector.load %arg11[%c0_64, %c0_65, %c0_66] : memref<2x16x4xf32, #tpu.memory_space<vmem>>, vector<2x16x4xf32>
    tpu.vector_store %arg11[%c0_64, %c0_65, %c0_66], %162 {strides = array<i32>} : memref<2x16x4xf32, #tpu.memory_space<vmem>>, vector<2x16x4xf32>,
    return
  }
  func.func @transform_0(%arg0: i32) -> (i32, i32, i32) {
    %c0_i32 = arith.constant 0 : i32
    %c0_i32_0 = arith.constant 0 : i32
    %c0_i32_1 = arith.constant 0 : i32
    return %arg0, %c0_i32, %c0_i32_0 : i32, i32, i32
  }
  func.func @transform_1(%arg0: i32) -> (i32, i32, i32) {
    %c0_i32 = arith.constant 0 : i32
    %c0_i32_0 = arith.constant 0 : i32
    %c0_i32_1 = arith.constant 0 : i32
    %c0_i32_2 = arith.constant 0 : i32
    return %c0_i32, %c0_i32_0, %c0_i32_1 : i32, i32, i32
  }
  func.func @transform_2(%arg0: i32) -> (i32, i32) {
    %c0_i32 = arith.constant 0 : i32
    %c0_i32_0 = arith.constant 0 : i32
    %c0_i32_1 = arith.constant 0 : i32
    return %c0_i32, %c0_i32_0 : i32, i32
  }
  func.func @transform_3(%arg0: i32) -> (i32, i32, i32) {
    %c0_i32 = arith.constant 0 : i32
    %c0_i32_0 = arith.constant 0 : i32
    %c0_i32_1 = arith.constant 0 : i32
    %c0_i32_2 = arith.constant 0 : i32
    return %c0_i32, %c0_i32_0, %c0_i32_1 : i32, i32, i32
  }
  func.func @transform_4(%arg0: i32) -> (i32, i32) {
    %c0_i32 = arith.constant 0 : i32
    %c0_i32_0 = arith.constant 0 : i32
    %c0_i32_1 = arith.constant 0 : i32
    return %c0_i32, %c0_i32_0 : i32, i32
  }
  func.func @transform_5(%arg0: i32) -> (i32, i32, i32) {
    %c0_i32 = arith.constant 0 : i32
    %c0_i32_0 = arith.constant 0 : i32
    %c0_i32_1 = arith.constant 0 : i32
    %c0_i32_2 = arith.constant 0 : i32
    return %c0_i32, %c0_i32_0, %c0_i32_1 : i32, i32, i32
  }
  func.func @transform_6(%arg0: i32) -> (i32, i32) {
    %c0_i32 = arith.constant 0 : i32
    %c0_i32_0 = arith.constant 0 : i32
    %c0_i32_1 = arith.constant 0 : i32
    return %c0_i32, %c0_i32_0 : i32, i32
  }
  func.func @transform_7(%arg0: i32) -> (i32, i32, i32) {
    %c0_i32 = arith.constant 0 : i32
    %c0_i32_0 = arith.constant 0 : i32
    %c0_i32_1 = arith.constant 0 : i32
    %c0_i32_2 = arith.constant 0 : i32
    return %c0_i32, %c0_i32_0, %c0_i32_1 : i32, i32, i32
  }
  func.func @transform_8(%arg0: i32) -> (i32, i32) {
    %c0_i32 = arith.constant 0 : i32
    %c0_i32_0 = arith.constant 0 : i32
    %c0_i32_1 = arith.constant 0 : i32
    return %c0_i32, %c0_i32_0 : i32, i32
  }
  func.func @transform_9(%arg0: i32) -> (i32, i32, i32) {
    %c0_i32 = arith.constant 0 : i32
    %c0_i32_0 = arith.constant 0 : i32
    %c0_i32_1 = arith.constant 0 : i32
    return %arg0, %c0_i32, %c0_i32_0 : i32, i32, i32
  }
  func.func @transform_10(%arg0: i32) -> (i32, i32, i32) {
    %c0_i32 = arith.constant 0 : i32
    %c0_i32_0 = arith.constant 0 : i32
    %c0_i32_1 = arith.constant 0 : i32
    return %arg0, %c0_i32, %c0_i32_0 : i32, i32, i32
  }
}

module attributes {stable_mosaic.version = 11 : i64} {
  func.func @_pcc_kernel(%arg0: i32, %arg1: memref<2x128xf32, #tpu.memory_space<vmem>>, %arg2: memref<128x128xf32, #tpu.memory_space<vmem>>, %arg3: memref<2x128xf32, #tpu.memory_space<vmem>>) attributes {dimension_semantics = [#tpu.dimension_semantics<parallel>], iteration_bounds = array<i64: 1>, scalar_prefetch = 0 : i64, scratch_operands = 0 : i64, tpu.core_type = #tpu.core_type<tc>, window_params = [{transform_indices = @transform_0, window_bounds = array<i64: 2, 128>}, {pipeline_mode = #tpu.pipeline_mode<synchronous>, transform_indices = @transform_1, window_bounds = array<i64: 128, 128>}, {transform_indices = @transform_2, window_bounds = array<i64: 2, 128>}]} {
    %c0 = arith.constant 0 : index
    %c0_0 = arith.constant 0 : index
    %0 = vector.load %arg1[%c0, %c0_0] : memref<2x128xf32, #tpu.memory_space<vmem>>, vector<2x128xf32>
    %cst = arith.constant dense<0.000000e+00> : vector<2xf32>
    %1 = vector.multi_reduction <add>, %0, %cst [1] : vector<2x128xf32> to vector<2xf32>
    %2 = vector.shape_cast %1 : vector<2xf32> to vector<2x1xf32>
    %cst_1 = arith.constant 1.280000e+02 : f32
    %3 = vector.broadcast %cst_1 : f32 to vector<2x1xf32>
    %4 = arith.divf %2, %3 : vector<2x1xf32>
    %5 = vector.broadcast %4 : vector<2x1xf32> to vector<2x128xf32>
    %6 = arith.subf %0, %5 : vector<2x128xf32>
    %7 = arith.mulf %6, %6 : vector<2x128xf32>
    %cst_2 = arith.constant dense<0.000000e+00> : vector<2xf32>
    %8 = vector.multi_reduction <add>, %7, %cst_2 [1] : vector<2x128xf32> to vector<2xf32>
    %9 = vector.shape_cast %8 : vector<2xf32> to vector<2x1xf32>
    %cst_3 = arith.constant 9.99999993E-9 : f32
    %10 = vector.broadcast %cst_3 : f32 to vector<2x1xf32>
    %11 = arith.addf %9, %10 : vector<2x1xf32>
    %12 = math.rsqrt %11 : vector<2x1xf32>
    %13 = vector.broadcast %12 : vector<2x1xf32> to vector<2x128xf32>
    %14 = arith.mulf %6, %13 : vector<2x128xf32>
    %c0_4 = arith.constant 0 : index
    %c0_5 = arith.constant 0 : index
    %15 = vector.load %arg2[%c0_4, %c0_5] : memref<128x128xf32, #tpu.memory_space<vmem>>, vector<128x128xf32>
    %cst_6 = arith.constant dense<0.000000e+00> : vector<2x128xf32>
    %16 = tpu.matmul %14, %15, %cst_6 {dimension_numbers = #tpu.dot_dimension_numbers<[1], [1], [0], [0], [0, 0, 1, 0], [], []>} : vector<2x128xf32>, vector<128x128xf32>, vector<2x128xf32> -> vector<2x128xf32>
    %cst_7 = arith.constant 1.000000e+00 : f32
    %17 = vector.broadcast %cst_7 : f32 to vector<2x128xf32>
    %18 = arith.mulf %17, %16 : vector<2x128xf32>
    %19 = tpu.iota {dimensions = array<i32: 1>} : vector<2x128xi32>
    %c3_i32 = arith.constant 3 : i32
    %20 = vector.broadcast %c3_i32 : i32 to vector<2x128xi32>
    %21 = arith.cmpi slt, %19, %20 : vector<2x128xi32>
    %cst_8 = arith.constant -1.000000e+30 : f32
    %22 = vector.broadcast %cst_8 : f32 to vector<2x128xf32>
    %23 = arith.select %21, %18, %22 : vector<2x128xi1>, vector<2x128xf32>
    %cst_9 = arith.constant dense<0xFF800000> : vector<2xf32>
    %24 = vector.multi_reduction <maximumf>, %23, %cst_9 [1] : vector<2x128xf32> to vector<2xf32>
    %25 = vector.shape_cast %24 : vector<2xf32> to vector<2x1xf32>
    %26 = vector.broadcast %25 : vector<2x1xf32> to vector<2x128xf32>
    %27 = arith.subf %23, %26 : vector<2x128xf32>
    %28 = math.exp %27 : vector<2x128xf32>
    %cst_10 = arith.constant dense<0.000000e+00> : vector<2xf32>
    %29 = vector.multi_reduction <add>, %28, %cst_10 [1] : vector<2x128xf32> to vector<2xf32>
    %30 = vector.shape_cast %29 : vector<2xf32> to vector<2x1xf32>
    %31 = tpu.reciprocal %30 {approx = true} : vector<2x1xf32> -> vector<2x1xf32>
    %32 = vector.broadcast %31 : vector<2x1xf32> to vector<2x128xf32>
    %33 = arith.mulf %28, %32 : vector<2x128xf32>
    %c0_11 = arith.constant 0 : index
    %c0_12 = arith.constant 0 : index
    %34 = vector.load %arg3[%c0_11, %c0_12] : memref<2x128xf32, #tpu.memory_space<vmem>>, vector<2x128xf32>
    tpu.vector_store %arg3[%c0_11, %c0_12], %33 {strides = array<i32>} : memref<2x128xf32, #tpu.memory_space<vmem>>, vector<2x128xf32>,
    return
  }
  func.func @transform_0(%arg0: i32) -> (i32, i32) {
    %c0_i32 = arith.constant 0 : i32
    %c0_i32_0 = arith.constant 0 : i32
    return %arg0, %c0_i32 : i32, i32
  }
  func.func @transform_1(%arg0: i32) -> (i32, i32) {
    %c0_i32 = arith.constant 0 : i32
    %c0_i32_0 = arith.constant 0 : i32
    %c0_i32_1 = arith.constant 0 : i32
    return %c0_i32, %c0_i32_0 : i32, i32
  }
  func.func @transform_2(%arg0: i32) -> (i32, i32) {
    %c0_i32 = arith.constant 0 : i32
    %c0_i32_0 = arith.constant 0 : i32
    return %arg0, %c0_i32 : i32, i32
  }
}

</mosaic_0001>

<bundles_post_ra>
// kernel: csa_fs_forward.3
= control target key start
LH: loop header
LB: loop body
LE: loop exit
PB: predicated region body
PF: predicated region fallthrough
CT: control target
= control target key end

     0   :  { %vm13_vm0 = vcmask 1041408   ;;  %s302_s0 = inlined_call_operand.vmem [shape: f32[2,128], index: 0, kind: input, shape index: {}]   ;;  %s303_s1 = inlined_call_operand.vmem [shape: f32[128,128], index: 1, kind: input, shape index: {}]   ;;  %s304_s2 = inlined_call_operand.hbm [shape: f32[2,128], index: 2, kind: output, shape index: {}]  }
   0x1   :  { %v12_v0 = vld [vmem:[%s302_s0] sm:$0x3] }
   0x2   :  { %7 = vsyncpa [#allocation3], 0  ;;  %v14_v1 = vsel %vm13_vm0, %v12_v0, 0.0  ;;  %v42_v2 = vld [vmem:[%s303_s1 + $0x78] sm:$0xff]  ;;  %v226_v3 = vmov 0.0   ;;  %v41_v4 = vld [vmem:[%s303_s1 + $0x70] sm:$0xff]  ;;  %v113_v28 = vlaneseq }
   0x3   :  { %15 = vadd.xlane.f32.xlu0 %v14_v1  ;;  %160 = vmatprep.subr.mxu0 %v226_v3  ;;  %v40_v5 = vld [vmem:[%s303_s1 + $0x68] sm:$0xff]  ;;  %v39_v6 = vld [vmem:[%s303_s1 + $0x60] sm:$0xff]  ;;  %v38_v7 = vld [vmem:[%s303_s1 + $0x58] sm:$0xff]  ;;  %vm227_vm1 = vmmov 0  }
   0x4   :  { %161 = vmatpush3.xpose.msra.mxu0 %v42_v2  ;;  %v37_v8 = vld [vmem:[%s303_s1 + $0x50] sm:$0xff]  ;;  %v36_v9 = vld [vmem:[%s303_s1 + $0x48] sm:$0xff]  ;;  %v35_v10 = vld [vmem:[%s303_s1 + $0x40] sm:$0xff]  ;;  %192 = vmatprep.mubr.msk.f32.mxu0 %vm227_vm1, %v226_v3  ;;  %v114_v29 = vand.u32 127, %v113_v28 }
   0x5   :  { %162 = vmatprep.subr.mxu0 %v226_v3  ;;  %v34_v11 = vld [vmem:[%s303_s1 + $0x38] sm:$0xff]  ;;  %v33_v12 = vld [vmem:[%s303_s1 + $0x30] sm:$0xff]  ;;  %v32_v13 = vld [vmem:[%s303_s1 + $0x28] sm:$0xff] }
   0x6   :  { %v31_v14 = vld [vmem:[%s303_s1 + $0x20] sm:$0xff]  ;;  %v30_v20 = vld [vmem:[%s303_s1 + $0x18] sm:$0xff]  ;;  %v29_v21 = vld [vmem:[%s303_s1 + $0x10] sm:$0xff]  ;;  %vm115_vm2 = vcmp.lt.s32.totalorder %v114_v29, 3 }
   0x7   :  { %v28_v22 = vld [vmem:[%s303_s1 + $0x8] sm:$0xff]  ;;  %v27_v23 = vld [vmem:[%s303_s1] sm:$0xff]  ;;  %s228_s1 = smov [#allocation2]  }
   0x8   :  { %163 = vmatpush3.xpose.msra.mxu0 %v41_v4  ;;  %s135_s14 = sshll.u32 %s228_s1, 4  ;;  %s136_s14 = int_to_ptr.vmem [resolvable:$true] %s135_s14 }
   0x9   :  { %164 = vmatprep.subr.mxu0 %v226_v3  ;;  %s204_s0 = scalar_lea.vmem %s136_s14, 32  ;;  %p209_p1 = scmp.lt.s32.totalorder %s136_s14, %s136_s14 }
   0xa   :  { %p205_p0 = scmp.ne.s32.totalorder %s136_s14, %s204_s0  ;;  %p210_p2 = scmp.lt.s32.totalorder %s204_s0, %s204_s0 }
   0xc   :  { %165 = vmatpush3.xpose.msra.mxu0 %v40_v5  ;;  %p211_p3 = por %p210_p2, %p209_p1 }
   0xd   :  { %166 = vmatprep.subr.mxu0 %v226_v3 }
   0xe   :  { %p212_p4 = pnand %p211_p3, %p205_p0 }
  0x10   :  { %167 = vmatpush3.xpose.msra.mxu0 %v39_v6 }
  0x11   :  { %168 = vmatprep.subr.mxu0 %v226_v3 }
  0x14   :  { %169 = vmatpush3.xpose.msra.mxu0 %v38_v7 }
  0x15   :  { %170 = vmatprep.subr.mxu0 %v226_v3 }
  0x18   :  { %171 = vmatpush3.xpose.msra.mxu0 %v37_v8 }
  0x19   :  { %172 = vmatprep.subr.mxu0 %v226_v3 }
  0x1c   :  { %173 = vmatpush3.xpose.msra.mxu0 %v36_v9 }
  0x1d   :  { %174 = vmatprep.subr.mxu0 %v226_v3 }
  0x20   :  { %175 = vmatpush3.xpose.msra.mxu0 %v35_v10 }
  0x21   :  { %176 = vmatprep.subr.mxu0 %v226_v3 }
  0x24   :  { %177 = vmatpush3.xpose.msra.mxu0 %v34_v11 }
  0x25   :  { %178 = vmatprep.subr.mxu0 %v226_v3 }
  0x28   :  { %179 = vmatpush3.xpose.msra.mxu0 %v33_v12 }
  0x29   :  { %180 = vmatprep.subr.mxu0 %v226_v3 }
  0x2c   :  { %181 = vmatpush3.xpose.msra.mxu0 %v32_v13 }
  0x2d   :  { %182 = vmatprep.subr.mxu0 %v226_v3 }
  0x30   :  { %183 = vmatpush3.xpose.msra.mxu0 %v31_v14 }
  0x31   :  { %184 = vmatprep.subr.mxu0 %v226_v3 }
  0x34   :  { %185 = vmatpush3.xpose.msra.mxu0 %v30_v20 }
  0x35   :  { %186 = vmatprep.subr.mxu0 %v226_v3 }
  0x38   :  { %187 = vmatpush3.xpose.msra.mxu0 %v29_v21 }
  0x39   :  { %188 = vmatprep.subr.mxu0 %v226_v3 }
  0x3c   :  { %189 = vmatpush3.xpose.msra.mxu0 %v28_v22 }
  0x3d   :  { %190 = vmatprep.subr.mxu0 %v226_v3 }
  0x40   :  { %191 = vmatpush3.xpose.msra.mxu0 %v27_v23 }
  0x8c   :  { %v16_v15 = vpop.xlane.xlu0 %15 }
  0x8d   :  { %v18_v16 = vmul.f32 0.0078125, %v16_v15 }
  0x8f   :  { %v19_v17 = vsub.f32 %v12_v0, %v18_v16 }
  0x91   :  { %v20_v18 = vmul.f32 %v19_v17, %v19_v17 }
  0x93   :  { %v21_v19 = vsel %vm13_vm0, %v20_v18, 0.0 }
  0x94   :  { %22 = vadd.xlane.f32.xlu0 %v21_v19 }
 0x11d   :  { %v23_v24 = vpop.xlane.xlu0 %22 }
 0x11e   :  { %v24_v25 = vadd.f32 1e-08, %v23_v24 }
 0x120   :  { %198 = vrsqrt.f32 %v24_v25 }
 0x12d   :  { %v199_v26 = vpop.eup %198 }
 0x12e   :  { %v26_v27 = vmul.f32 %v199_v26, %v19_v17 }
 0x130   :  { %193 = vmatmul.mubr.f32.vlgmr.msra.gmra.mxu0 %v26_v27 }
 0x1f0   :  { %v109_v30 = vpop.f32.mrf.mxu0 }
 0x1f1   :  { %v116_v31 = vsel %vm115_vm2, %v109_v30, -1e+30 }
 0x1f2   :  { %v194_v32 = vpop.f32.mrf.mxu0  ;;  %v117_v33 = vsel %vm13_vm0, %v116_v31, -inf }
 0x1f3   :  { %118 = vmax.xlane.f32.xlu1 %v117_v33 }
 0x27c   :  { %v119_v34 = vpop.xlane.xlu1 %118 }
 0x27d   :  { %v120_v35 = vsub.f32 %v116_v31, %v119_v34 }
 0x27f   :  { %v121_v36 = vmul.f32 1.442695, %v120_v35 }
 0x281   :  { %200 = vpow2.f32 %v121_v36 }
 0x28e   :  { %v201_v37 = vpop.eup %200 }
 0x28f   :  { %v123_v38 = vsel %vm13_vm0, %v201_v37, 0.0 }
 0x290   :  { %124 = vadd.xlane.f32.xlu1 %v123_v38 }
 0x319   :  { %v125_v39 = vpop.xlane.xlu1 %124 }
 0x31a   :  { %202 = vrcp.f32 %v125_v39 }
 0x327   :  { %v203_v40 = vpop.eup %202 }
 0x328   :  { %v127_v41 = vmul.f32 %v203_v40, %v201_v37 }
 0x32a   :  { %128 = vst [vmem:[#allocation2] sm:$0x3] %v127_v41 }
 0x32b   :  { %215 = shalt.err (!%p212_p4)
}
 0x32c   :  { %138 = dma.vmem_to_hbm [thread:$0]  %s136_s14, 32, %s304_s2, [#allocation3]  }
 0x32d   :  { %224 = dma.done.wait [#allocation3], 32  }
 0x32e   :  { %225 = vsyncadd [#allocation3], 4294967264 }
 0x32f   :  { %142 = vsyncpa [#allocation3], 1 }

// kernel: csa_fs_forward.2
= control target key start
LH: loop header
LB: loop body
LE: loop exit
PB: predicated region body
PF: predicated region fallthrough
CT: control target
= control target key end

     0   :  { %vm73_vm0 = vcmask 1041408   ;;  %vm50_vm1 = vsmask.f32 7424  ;;  %vm66_vm2 = vcmask 31744   ;;  %vm306_vm3 = vcmask 1046528   ;;  %s2260_s1 = inlined_call_operand.vmem [shape: f32[3,4,16], index: 1, kind: input, shape index: {}]   ;;  %s2261_s0 = inlined_call_operand.vmem [shape: f32[2,24,4], index: 0, kind: input, shape index: {}]   ;;  %s2262_s3 = inlined_call_operand.vmem [shape: f32[3,16,8], index: 3, kind: input, shape index: {}]   ;;  %s2263_s2 = inlined_call_operand.vmem [shape: f32[1,16], index: 2, kind: input, shape index: {}]   ;;  %s2264_s5 = inlined_call_operand.vmem [shape: f32[3,8,16], index: 5, kind: input, shape index: {}]   ;;  %s2265_s4 = inlined_call_operand.vmem [shape: f32[1,8], index: 4, kind: input, shape index: {}]   ;;  %s2266_s9 = inlined_call_operand.vmem [shape: f32[2,16,8], index: 9, kind: output, shape index: {0}]   ;;  %s2267_s7 = inlined_call_operand.vmem [shape: f32[3,16,4], index: 7, kind: input, shape index: {}]   ;;  %s2268_s6 = inlined_call_operand.vmem [shape: f32[1,16], index: 6, kind: input, shape index: {}]   ;;  %s2269_s8 = inlined_call_operand.vmem [shape: f32[1,4], index: 8, kind: input, shape index: {}]   ;;  %s2270_s10 = inlined_call_operand.vmem [shape: f32[2,16,4], index: 10, kind: output, shape index: {1}]  }
   0x1   :  { %v1673_v0 = vld [vmem:[%s2260_s1 + $0x4] sm:$0xf]  ;;  %v36_v2 = vld [vmem:[%s2261_s0 + $0x8] sm:$0xff]  ;;  %v37_v4 = vld [vmem:[%s2261_s0 + $0x10] sm:$0xff]  ;;  %v451_v58 = vlaneseq  ;;  %vm502_vm6 = vcmask 130048   ;;  %vm937_vm7 = vcmask 1043456  }
   0x2   :  { %v35_v1 = vld [vmem:[%s2261_s0] sm:$0xff]  ;;  %v49_v3 = vpack.c.bf16 %v1673_v0, %v1673_v0  ;;  %v38_v6 = vld [vmem:[%s2261_s0 + $0x18] sm:$0xff]  ;;  %v42_v8 = vpack.c.bf16 %v37_v4, %v37_v4  ;;  %v40_v9 = vld [vmem:[%s2261_s0 + $0x28] sm:$0xff]  ;;  %vm902_vm9 = vcmask 58368   ;;  %vm898_vm11 = vcmask 64514  }
   0x3   :  { %v41_v5 = vpack.c.bf16 %v36_v2, %v35_v1  ;;  %v39_v7 = vld [vmem:[%s2261_s0 + $0x20] sm:$0xff]  ;;  %v44_v15 = vpack.c.bf16 %v40_v9, %v40_v9  ;;  %v1682_v28 = vld [vmem:[%s2260_s1 + $0x8] sm:$0xf]  ;;  %v1688_v43 = vld [vmem:[%s2262_s3 + $0x10] sm:$0xff]  ;;  %v2080_v63 = vshrl.u32 %v451_v58, 7  ;;  %vm900_vm12 = vcmask 64512  }
   0x4   :  { %v43_v10 = vpack.c.bf16 %v39_v7, %v38_v6  ;;  %v45_v11 = vld [vmem:[%s2260_s1] sm:$0xf]  ;;  %1941 = vmatprep.subr.msk.bf16.mxu0 %vm73_vm0, %v49_v3  ;;  %1942 = vmatprep.subr.msk.bf16.mxu1 %vm73_vm0, %v49_v3  ;;  %v75_v12 = vsel %vm73_vm0, %v49_v3, 0  ;;  %v59_v16 = vshll.u32 %v42_v8, 16  ;;  %v63_v17 = vshrl.u32 %v42_v8, 16  ;;  %v1689_v44 = vld [vmem:[%s2262_s3 + $0x18] sm:$0xff] }
   0x5   :  { %v52_v13 = vshrl.u32 %v41_v5, 16  ;;  %v54_v14 = vshll.u32 %v41_v5, 16  ;;  %1798 = vmatpush3.bf16.msra.mxu0 %v75_v12  ;;  %1804 = vmatpush3.bf16.msra.mxu1 %v75_v12  ;;  %v133_v21 = vshll.u32 %v44_v15, 16  ;;  %v137_v22 = vshrl.u32 %v44_v15, 16  ;;  %v480_v46 = vld [vmem:[%s2262_s3] sm:$0xff]  ;;  %v481_v47 = vld [vmem:[%s2262_s3 + $0x8] sm:$0xff] }
   0x6   :  { %v126_v18 = vshrl.u32 %v43_v10, 16  ;;  %v128_v19 = vshll.u32 %v43_v10, 16  ;;  %v46_v23 = vpack.c.bf16 %v45_v11, %v45_v11  ;;  %v61_v24 = vrot.slane %v59_v16, 1  ;;  %v1687_v6 = vld [vmem:[%s2263_s2] ss:$0 sm:$0xff] }
   0x7   :  { %v56_v20 = vrot.slane %v54_v14, 1  ;;  %v135_v27 = vrot.slane %v133_v21, 1  ;;  %v303_v35 = vpack.c.bf16 %v1682_v28, %v1682_v28  ;;  %v307_v36 = vrot.slane %v41_v5, 1  ;;  %v1698_v58 = vld [vmem:[%s2262_s3 + $0x20] sm:$0xff] }
   0x8   :  { %v130_v25 = vrot.slane %v128_v19, 1  ;;  %1943 = vmatprep.subr.msk.bf16.mxu0 %vm73_vm0, %v46_v23  ;;  %1944 = vmatprep.subr.msk.bf16.mxu1 %vm73_vm0, %v46_v23  ;;  %v65_v29 = vor.u32 %v63_v17, %v61_v24  ;;  %v199_v33 = vsel %vm73_vm0, %v46_v23, 0  ;;  %v308_v37 = vrot.slane %v42_v8, 1 }
   0x9   :  { %v57_v26 = vor.u32 %v56_v20, %v52_v13  ;;  %v139_v32 = vor.u32 %v137_v22, %v135_v27  ;;  %v369_v38 = vrot.slane %v43_v10, 1  ;;  %v370_v39 = vrot.slane %v44_v15, 1 }
   0xa   :  { %v131_v30 = vor.u32 %v130_v25, %v126_v18  ;;  %v317_v40 = vsel %vm73_vm0, %v303_v35, 0  ;;  %v309_v41 = vsel %vm306_vm3, %v307_v36, %v308_v37  ;;  %v486_v45 = vpack.c.bf16 %v1689_v44, %v1688_v43 }
   0xb   :  { %v62_v31 = vsel %vm50_vm1, %v57_v26, %v61_v24  ;;  %v371_v42 = vsel %vm306_vm3, %v369_v38, %v370_v39  ;;  %v2076_v48 = vpack.c.bf16 %v481_v47, %v480_v46  ;;  %v2086_v7 = vadd.s32 16, %v2080_v63 }
   0xc   :  { %1799 = vmatprep.mubr.msk.bf16.mxu0 %vm66_vm2, %v62_v31  ;;  %v136_v34 = vsel %vm50_vm1, %v131_v30, %v135_v27  ;;  %vm455_vm5 = vcmp.ge.s32.totalorder %v2080_v63, 3  ;;  %vm877_vm10 = vcmp.ge.s32.totalorder %v2080_v63, 2  ;;  %vm1956_vm13 = vmmov 0  }
   0xd   :  { %1805 = vmatprep.mubr.msk.bf16.mxu1 %vm66_vm2, %v136_v34  ;;  %1800 = vmatmul.mubr.msk.bf16.vlgmr.msra.gmra.mxu0 %vm66_vm2, %v65_v29  ;;  %vm460_vm4 = vcmp.lt.s32.totalorder %v2086_v7, 19  ;;  %vm882_vm8 = vcmp.lt.s32.totalorder %v2086_v7, 18  ;;  %vm1319_vm14 = vcmp.lt.s32.totalorder %v2086_v7, 17  ;;  %vm1314_vm15 = vcmp.ge.s32.totalorder %v2080_v63, 1  ;;  %v1340_v63 = vld [vmem:[%s2267_s7 + $0x8] sm:$0xff] }
   0xe   :  { %1806 = vmatmul.mubr.msk.bf16.vlgmr.msra.gmra.mxu1 %vm66_vm2, %v139_v32  ;;  %1810 = vmatpush3.bf16.msra.mxu0 %v199_v33 }
   0xf   :  { %1816 = vmatpush3.bf16.msra.mxu1 %v199_v33  ;;  %1811 = vmatprep.mubr.msk.bf16.mxu0 %vm66_vm2, %v41_v5 }
  0x10   :  { %1817 = vmatprep.mubr.msk.bf16.mxu1 %vm66_vm2, %v43_v10  ;;  %1945 = vmatprep.subr.msk.bf16.mxu0 %vm73_vm0, %v303_v35 }
  0x11   :  { %1946 = vmatprep.subr.msk.bf16.mxu1 %vm73_vm0, %v303_v35 }
  0x15   :  { %1812 = vmatmul.mubr.msk.bf16.vlgmr.msra.gmra.mxu0 %vm66_vm2, %v42_v8 }
  0x16   :  { %1818 = vmatmul.mubr.msk.bf16.vlgmr.msra.gmra.mxu1 %vm66_vm2, %v44_v15  ;;  %1822 = vmatpush3.bf16.msra.mxu0 %v317_v40 }
  0x17   :  { %1828 = vmatpush3.bf16.msra.mxu1 %v317_v40  ;;  %1823 = vmatprep.mubr.msk.bf16.mxu0 %vm66_vm2, %v309_v41 }
  0x18   :  { %1829 = vmatprep.mubr.msk.bf16.mxu1 %vm66_vm2, %v371_v42  ;;  %1833 = vmatprep.subr.bf16.mxu0 %v486_v45 }
  0x19   :  { %1839 = vmatprep.subr.bf16.mxu1 %v486_v45 }
  0x1d   :  { %1824 = vmatmul.mubr.msk.bf16.vlgmr.msra.gmra.mxu0 %vm66_vm2, %v308_v37 }
  0x1e   :  { %1830 = vmatmul.mubr.msk.bf16.vlgmr.msra.gmra.mxu1 %vm66_vm2, %v370_v39  ;;  %1834 = vmatpush3.bf16.msra.mxu0 %v486_v45 }
  0x1f   :  { %1840 = vmatpush3.bf16.msra.mxu1 %v486_v45  ;;  %1845 = vmatprep.subr.bf16.mxu0 %v2076_v48 }
  0x20   :  { %1851 = vmatprep.subr.bf16.mxu1 %v2076_v48 }
  0xcd   :  { %v1801_v49 = vpop.f32.mrf.mxu0 }
  0xce   :  { %v1807_v50 = vpop.f32.mrf.mxu1 }
  0xcf   :  { %v111_v51 = vpop.f32.mrf.mxu0 }
  0xd0   :  { %v180_v52 = vpop.f32.mrf.mxu1 }
  0xd1   :  { %v1802_v53 = vpop.f32.mrf.mxu0 }
  0xd2   :  { %v1808_v54 = vpop.f32.mrf.mxu1 }
  0xd3   :  { %v114_v55 = vpop.f32.mrf.mxu0 }
  0xd4   :  { %v183_v56 = vpop.f32.mrf.mxu1 }
  0xd5   :  { %v1813_v57 = vpop.f32.mrf.mxu0 }
  0xd6   :  { %v1819_v59 = vpop.f32.mrf.mxu1  ;;  %v244_v2 = vadd.f32 %v1813_v57, %v1801_v49 }
  0xd7   :  { %v235_v60 = vpop.f32.mrf.mxu0  ;;  %v296_v4 = vadd.f32 %v1819_v59, %v1807_v50  ;;  %v1699_v59 = vld [vmem:[%s2262_s3 + $0x28] sm:$0xff] }
  0xd8   :  { %v287_v61 = vpop.f32.mrf.mxu1  ;;  %v236_v8 = vadd.f32 %v235_v60, %v111_v51 }
  0xd9   :  { %v1814_v62 = vpop.f32.mrf.mxu0  ;;  %v288_v11 = vadd.f32 %v287_v61, %v180_v52 }
  0xda   :  { %v1820_v0 = vpop.f32.mrf.mxu1 }
  0xdb   :  { %v238_v1 = vpop.f32.mrf.mxu0 }
  0xdc   :  { %v290_v3 = vpop.f32.mrf.mxu1  ;;  %v239_v20 = vadd.f32 %v238_v1, %v114_v55 }
  0xdd   :  { %v1825_v5 = vpop.f32.mrf.mxu0  ;;  %v291_v24 = vadd.f32 %v290_v3, %v183_v56  ;;  %v733_v3 = vpack.c.bf16 %v1699_v59, %v1698_v58 }
  0xde   :  { %v428_v9 = vadd.f32 %v1825_v5, %v244_v2  ;;  %v1831_v10 = vpop.f32.mrf.mxu1 }
  0xdf   :  { %v431_v12 = vadd.f32 %v1831_v10, %v296_v4  ;;  %v353_v13 = vpop.f32.mrf.mxu0  ;;  %v1705_v10 = vld [vmem:[%s2264_s5 + $0x8] sm:$0xff] }
  0xe0   :  { %v441_v14 = vadd.f32 %v1687_v6, %v428_v9  ;;  %v426_v15 = vadd.f32 %v353_v13, %v236_v8  ;;  %v412_v16 = vpop.f32.mrf.mxu1  ;;  %v911_v13 = vld [vmem:[%s2264_s5] sm:$0xff] }
  0xe1   :  { %v444_v17 = vadd.f32 %v1687_v6, %v431_v12  ;;  %v429_v18 = vadd.f32 %v412_v16, %v288_v11  ;;  %v1826_v19 = vpop.f32.mrf.mxu0  ;;  %v915_v11 = vpack.c.bf16 %v1705_v10, %v1705_v10 }
  0xe2   :  { %v447_v21 = vmax.f32 %v441_v14, 0.0  ;;  %v439_v22 = vadd.f32 %v1687_v6, %v426_v15  ;;  %v1832_v23 = vpop.f32.mrf.mxu1  ;;  %v2123_v14 = vpack.c.bf16 %v911_v13, %v911_v13 }
  0xe3   :  { %v450_v25 = vmax.f32 %v444_v17, 0.0  ;;  %v442_v26 = vadd.f32 %v1687_v6, %v429_v18  ;;  %v356_v27 = vpop.f32.mrf.mxu0  ;;  %v939_v12 = vsel %vm937_vm7, %v915_v11, 0 }
  0xe4   :  { %v472_v28 = vsel %vm460_vm4, %v447_v21, 0.0  ;;  %v427_v29 = vadd.f32 %v356_v27, %v239_v20  ;;  %v415_v30 = vpop.f32.mrf.mxu1  ;;  %v445_v32 = vmax.f32 %v439_v22, 0.0 }
  0xe5   :  { %v475_v31 = vsel %vm460_vm4, %v450_v25, 0.0  ;;  %v430_v33 = vadd.f32 %v415_v30, %v291_v24  ;;  %v477_v34 = vpack.c.bf16 %v472_v28, %v472_v28  ;;  %v448_v35 = vmax.f32 %v442_v26, 0.0 }
  0xe6   :  { %v440_v36 = vadd.f32 %v1687_v6, %v427_v29  ;;  %v479_v37 = vpack.c.bf16 %v475_v31, %v475_v31  ;;  %v470_v40 = vsel %vm455_vm5, %v445_v32, 0.0 }
  0xe7   :  { %v443_v38 = vadd.f32 %v1687_v6, %v430_v33  ;;  %v473_v42 = vsel %vm455_vm5, %v448_v35, 0.0  ;;  %v495_v44 = vshll.u32 %v477_v34, 16  ;;  %v499_v57 = vshrl.u32 %v477_v34, 16 }
  0xe8   :  { %v446_v39 = vmax.f32 %v440_v36, 0.0  ;;  %v565_v46 = vshll.u32 %v479_v37, 16  ;;  %v569_v61 = vshrl.u32 %v479_v37, 16  ;;  %v737_v6 = vrot.slane %v477_v34, 1 }
  0xe9   :  { %v449_v41 = vmax.f32 %v443_v38, 0.0  ;;  %v497_v52 = vrot.slane %v495_v44, 1  ;;  %v796_v8 = vrot.slane %v479_v37, 1 }
  0xea   :  { %v476_v43 = vpack.c.bf16 %v446_v39, %v470_v40  ;;  %v567_v55 = vrot.slane %v565_v46, 1 }
  0xeb   :  { %v478_v45 = vpack.c.bf16 %v449_v41, %v473_v42  ;;  %v501_v0 = vor.u32 %v499_v57, %v497_v52 }
  0xec   :  { %v490_v47 = vshll.u32 %v476_v43, 16  ;;  %v488_v50 = vshrl.u32 %v476_v43, 16  ;;  %v571_v2 = vor.u32 %v569_v61, %v567_v55  ;;  %v736_v4 = vrot.slane %v476_v43, 1 }
  0xed   :  { %v560_v49 = vshll.u32 %v478_v45, 16  ;;  %v558_v53 = vshrl.u32 %v478_v45, 16  ;;  %v795_v5 = vrot.slane %v478_v45, 1 }
  0xee   :  { %v492_v51 = vrot.slane %v490_v47, 1  ;;  %v738_v9 = vsel %vm306_vm3, %v736_v4, %v737_v6 }
  0xef   :  { %v562_v54 = vrot.slane %v560_v49, 1 }
  0xf0   :  { %v493_v56 = vor.u32 %v492_v51, %v488_v50 }
  0xf1   :  { %v563_v60 = vor.u32 %v562_v54, %v558_v53 }
  0xf2   :  { %v498_v62 = vsel %vm50_vm1, %v493_v56, %v497_v52 }
  0xf3   :  { %1835 = vmatprep.mubr.msk.bf16.mxu0 %vm502_vm6, %v498_v62  ;;  %v568_v1 = vsel %vm50_vm1, %v563_v60, %v567_v55 }
  0xf4   :  { %1841 = vmatprep.mubr.msk.bf16.mxu1 %vm502_vm6, %v568_v1  ;;  %1836 = vmatmul.mubr.msk.bf16.vlgmr.msra.gmra.mxu0 %vm502_vm6, %v501_v0 }
  0xf5   :  { %1842 = vmatmul.mubr.msk.bf16.vlgmr.msra.gmra.mxu1 %vm502_vm6, %v571_v2  ;;  %1846 = vmatpush3.bf16.msra.mxu0 %v2076_v48 }
  0xf6   :  { %1852 = vmatpush3.bf16.msra.mxu1 %v2076_v48  ;;  %1847 = vmatprep.mubr.msk.bf16.mxu0 %vm502_vm6, %v476_v43  ;;  %v797_v48 = vsel %vm306_vm3, %v795_v5, %v796_v8 }
  0xf7   :  { %1853 = vmatprep.mubr.msk.bf16.mxu1 %vm502_vm6, %v478_v45  ;;  %1857 = vmatprep.subr.bf16.mxu0 %v733_v3 }
  0xf8   :  { %1863 = vmatprep.subr.bf16.mxu1 %v733_v3 }
  0xfc   :  { %1848 = vmatmul.mubr.msk.bf16.vlgmr.msra.gmra.mxu0 %vm502_vm6, %v477_v34  ;;  %v1704_v34 = vld [vmem:[%s2265_s4] ss:$0 sm:$0xff] }
  0xfd   :  { %1854 = vmatmul.mubr.msk.bf16.vlgmr.msra.gmra.mxu1 %vm502_vm6, %v479_v37  ;;  %1858 = vmatpush3.bf16.msra.mxu0 %v733_v3 }
  0xfe   :  { %1864 = vmatpush3.bf16.msra.mxu1 %v733_v3  ;;  %1859 = vmatprep.mubr.msk.bf16.mxu0 %vm502_vm6, %v738_v9 }
  0xff   :  { %1865 = vmatprep.mubr.msk.bf16.mxu1 %vm502_vm6, %v797_v48  ;;  %1947 = vmatprep.subr.msk.bf16.mxu0 %vm937_vm7, %v915_v11 }
 0x100   :  { %1948 = vmatprep.subr.msk.bf16.mxu1 %vm937_vm7, %v915_v11 }
 0x104   :  { %1860 = vmatmul.mubr.msk.bf16.vlgmr.msra.gmra.mxu0 %vm502_vm6, %v737_v6 }
 0x105   :  { %1866 = vmatmul.mubr.msk.bf16.vlgmr.msra.gmra.mxu1 %vm502_vm6, %v796_v8  ;;  %1870 = vmatpush3.bf16.msra.mxu0 %v939_v12 }
 0x106   :  { %1876 = vmatpush3.bf16.msra.mxu1 %v939_v12  ;;  %1949 = vmatprep.subr.msk.bf16.mxu0 %vm937_vm7, %v2123_v14 }
 0x107   :  { %1950 = vmatprep.subr.msk.bf16.mxu1 %vm937_vm7, %v2123_v14 }
 0x1b4   :  { %v1837_v15 = vpop.f32.mrf.mxu0 }
 0x1b5   :  { %v1843_v16 = vpop.f32.mrf.mxu1 }
 0x1b6   :  { %v543_v17 = vpop.f32.mrf.mxu0 }
 0x1b7   :  { %v612_v18 = vpop.f32.mrf.mxu1 }
 0x1b8   :  { %v1838_v19 = vpop.f32.mrf.mxu0 }
 0x1b9   :  { %v1844_v20 = vpop.f32.mrf.mxu1 }
 0x1ba   :  { %v546_v21 = vpop.f32.mrf.mxu0 }
 0x1bb   :  { %v615_v22 = vpop.f32.mrf.mxu1 }
 0x1bc   :  { %v1849_v23 = vpop.f32.mrf.mxu0 }
 0x1bd   :  { %v1855_v24 = vpop.f32.mrf.mxu1  ;;  %v673_v30 = vadd.f32 %v1849_v23, %v1837_v15  ;;  %v1714_v23 = vld [vmem:[%s2264_s5 + $0x10] sm:$0xff] }
 0x1be   :  { %v664_v25 = vpop.f32.mrf.mxu0  ;;  %v725_v32 = vadd.f32 %v1855_v24, %v1843_v16 }
 0x1bf   :  { %v716_v26 = vpop.f32.mrf.mxu1  ;;  %v665_v35 = vadd.f32 %v664_v25, %v543_v17 }
 0x1c0   :  { %v1850_v27 = vpop.f32.mrf.mxu0  ;;  %v717_v38 = vadd.f32 %v716_v26, %v612_v18 }
 0x1c1   :  { %v1856_v28 = vpop.f32.mrf.mxu1 }
 0x1c2   :  { %v667_v29 = vpop.f32.mrf.mxu0  ;;  %v1063_v28 = vsel %vm937_vm7, %v2123_v14, 0 }
 0x1c3   :  { %v719_v31 = vpop.f32.mrf.mxu1  ;;  %v668_v47 = vadd.f32 %v667_v29, %v546_v21 }
 0x1c4   :  { %v1861_v33 = vpop.f32.mrf.mxu0  ;;  %v720_v52 = vadd.f32 %v719_v31, %v615_v22  ;;  %v1167_v31 = vpack.c.bf16 %v1714_v23, %v1714_v23 }
 0x1c5   :  { %v854_v36 = vadd.f32 %v1861_v33, %v673_v30  ;;  %v1867_v37 = vpop.f32.mrf.mxu1 }
 0x1c6   :  { %v857_v39 = vadd.f32 %v1867_v37, %v725_v32  ;;  %v779_v40 = vpop.f32.mrf.mxu0  ;;  %v1180_v32 = vsel %vm937_vm7, %v1167_v31, 0 }
 0x1c7   :  { %v867_v41 = vadd.f32 %v1704_v34, %v854_v36  ;;  %v852_v42 = vadd.f32 %v779_v40, %v665_v35  ;;  %v838_v43 = vpop.f32.mrf.mxu1  ;;  %v1721_v40 = vld [vmem:[%s2267_s7 + $0x18] sm:$0xff] }
 0x1c8   :  { %v870_v44 = vadd.f32 %v1704_v34, %v857_v39  ;;  %v855_v45 = vadd.f32 %v838_v43, %v717_v38  ;;  %v1862_v46 = vpop.f32.mrf.mxu0  ;;  %v1955_v38 = vmov 0.0   ;;  %v1720_v39 = vld [vmem:[%s2267_s7 + $0x10] sm:$0xff] }
 0x1c9   :  { %v873_v49 = vmax.f32 %v867_v41, 0.0  ;;  %v865_v50 = vadd.f32 %v1704_v34, %v852_v42  ;;  %v1868_v51 = vpop.f32.mrf.mxu1  ;;  %v1345_v41 = vpack.c.bf16 %v1721_v40, %v1720_v39 }
 0x1ca   :  { %v876_v53 = vmax.f32 %v870_v44, 0.0  ;;  %v868_v54 = vadd.f32 %v1704_v34, %v855_v45  ;;  %v782_v55 = vpop.f32.mrf.mxu0 }
 0x1cb   :  { %v894_v56 = vsel %vm882_vm8, %v873_v49, 0.0  ;;  %v871_v57 = vmax.f32 %v865_v50, 0.0  ;;  %v853_v58 = vadd.f32 %v782_v55, %v668_v47  ;;  %v841_v59 = vpop.f32.mrf.mxu1 }
 0x1cc   :  { %903 = vst.msk [vmem:[%s2266_s9 + $0xe] sm:$0x3] %vm902_vm9, %v894_v56  ;;  %v897_v60 = vsel %vm882_vm8, %v876_v53, 0.0  ;;  %v874_v61 = vmax.f32 %v868_v54, 0.0  ;;  %v856_v62 = vadd.f32 %v841_v59, %v720_v52  ;;  %v908_v0 = vpack.c.bf16 %v894_v56, %v894_v56 }
 0x1cd   :  { %906 = vst.msk [vmem:[%s2266_s9 + $0x1e] sm:$0x3] %vm902_vm9, %v897_v60  ;;  %v892_v1 = vsel %vm877_vm10, %v871_v57, 0.0  ;;  %v866_v2 = vadd.f32 %v1704_v34, %v853_v58  ;;  %v910_v3 = vpack.c.bf16 %v897_v60, %v897_v60 }
 0x1ce   :  { %899 = vst.msk [vmem:[%s2266_s9 - $0x2] sm:$0xfc] %vm898_vm11, %v892_v1  ;;  %v895_v4 = vsel %vm877_vm10, %v874_v61, 0.0  ;;  %v869_v5 = vadd.f32 %v1704_v34, %v856_v62  ;;  %v924_v48 = vshll.u32 %v908_v0, 16  ;;  %v928_v22 = vshrl.u32 %v908_v0, 16 }
 0x1cf   :  { %904 = vst.msk [vmem:[%s2266_s9 + $0xe] sm:$0xfc] %vm898_vm11, %v895_v4  ;;  %v872_v6 = vmax.f32 %v866_v2, 0.0  ;;  %v997_v11 = vshll.u32 %v910_v3, 16  ;;  %v1001_v25 = vshrl.u32 %v910_v3, 16  ;;  %v1171_v34 = vrot.slane %v908_v0, 1 }
 0x1d0   :  { %v875_v8 = vmax.f32 %v869_v5, 0.0  ;;  %v926_v17 = vrot.slane %v924_v48, 1  ;;  %v1233_v35 = vrot.slane %v910_v3, 1  ;;  %v1719_v62 = vld [vmem:[%s2268_s6] ss:$0 sm:$0xff] }
 0x1d1   :  { %901 = vst.msk [vmem:[%s2266_s9 + $0x6] sm:$0xff] %vm900_vm12, %v872_v6  ;;  %v907_v9 = vpack.c.bf16 %v872_v6, %v892_v1  ;;  %v999_v20 = vrot.slane %v997_v11, 1 }
 0x1d2   :  { %905 = vst.msk [vmem:[%s2266_s9 + $0x16] sm:$0xff] %vm900_vm12, %v875_v8  ;;  %v909_v10 = vpack.c.bf16 %v875_v8, %v895_v4  ;;  %v930_v27 = vor.u32 %v928_v22, %v926_v17 }
 0x1d3   :  { %v919_v12 = vshll.u32 %v907_v9, 16  ;;  %v917_v15 = vshrl.u32 %v907_v9, 16  ;;  %v1003_v30 = vor.u32 %v1001_v25, %v999_v20  ;;  %v1170_v14 = vrot.slane %v907_v9, 1 }
 0x1d4   :  { %v992_v13 = vshll.u32 %v909_v10, 16  ;;  %v990_v18 = vshrl.u32 %v909_v10, 16  ;;  %v1232_v33 = vrot.slane %v909_v10, 1 }
 0x1d5   :  { %v921_v16 = vrot.slane %v919_v12, 1  ;;  %v1172_v36 = vsel %vm306_vm3, %v1170_v14, %v1171_v34 }
 0x1d6   :  { %v994_v19 = vrot.slane %v992_v13, 1  ;;  %v1234_v37 = vsel %vm306_vm3, %v1232_v33, %v1233_v35 }
 0x1d7   :  { %v922_v21 = vor.u32 %v921_v16, %v917_v15 }
 0x1d8   :  { %v995_v24 = vor.u32 %v994_v19, %v990_v18 }
 0x1d9   :  { %v927_v26 = vsel %vm50_vm1, %v922_v21, %v926_v17 }
 0x1da   :  { %1871 = vmatprep.mubr.msk.bf16.mxu0 %vm900_vm12, %v927_v26  ;;  %v1000_v29 = vsel %vm50_vm1, %v995_v24, %v999_v20 }
 0x1db   :  { %1877 = vmatprep.mubr.msk.bf16.mxu1 %vm900_vm12, %v1000_v29  ;;  %1872 = vmatmul.mubr.msk.bf16.vlgmr.msra.gmra.mxu0 %vm900_vm12, %v930_v27 }
 0x1dc   :  { %1878 = vmatmul.mubr.msk.bf16.vlgmr.msra.gmra.mxu1 %vm900_vm12, %v1003_v30  ;;  %1882 = vmatpush3.bf16.msra.mxu0 %v1063_v28 }
 0x1dd   :  { %1888 = vmatpush3.bf16.msra.mxu1 %v1063_v28  ;;  %1883 = vmatprep.mubr.msk.bf16.mxu0 %vm900_vm12, %v907_v9 }
 0x1de   :  { %1889 = vmatprep.mubr.msk.bf16.mxu1 %vm900_vm12, %v909_v10  ;;  %1951 = vmatprep.subr.msk.bf16.mxu0 %vm937_vm7, %v1167_v31 }
 0x1df   :  { %1952 = vmatprep.subr.msk.bf16.mxu1 %vm937_vm7, %v1167_v31 }
 0x1e3   :  { %1884 = vmatmul.mubr.msk.bf16.vlgmr.msra.gmra.mxu0 %vm900_vm12, %v908_v0 }
 0x1e4   :  { %1890 = vmatmul.mubr.msk.bf16.vlgmr.msra.gmra.mxu1 %vm900_vm12, %v910_v3  ;;  %1894 = vmatpush3.bf16.msra.mxu0 %v1180_v32 }
 0x1e5   :  { %1900 = vmatpush3.bf16.msra.mxu1 %v1180_v32  ;;  %1895 = vmatprep.mubr.msk.bf16.mxu0 %vm900_vm12, %v1172_v36 }
 0x1e6   :  { %1901 = vmatprep.mubr.msk.bf16.mxu1 %vm900_vm12, %v1234_v37  ;;  %1905 = vmatprep.subr.bf16.mxu0 %v1955_v38 }
 0x1e7   :  { %1911 = vmatprep.subr.bf16.mxu1 %v1955_v38 }
 0x1eb   :  { %1896 = vmatmul.mubr.msk.bf16.vlgmr.msra.gmra.mxu0 %vm900_vm12, %v1171_v34 }
 0x1ec   :  { %1902 = vmatmul.mubr.msk.bf16.vlgmr.msra.gmra.mxu1 %vm900_vm12, %v1233_v35  ;;  %1907 = vmatprep.mubr.msk.bf16.mxu0 %vm1956_vm13, %v1955_v38 }
 0x1ed   :  { %1913 = vmatprep.mubr.msk.bf16.mxu1 %vm1956_vm13, %v1955_v38  ;;  %1906 = vmatpush3.bf16.msra.mxu0 %v1345_v41 }
 0x1ee   :  { %1912 = vmatpush3.bf16.msra.mxu1 %v1345_v41  ;;  %1917 = vmatprep.subr.bf16.mxu0 %v1955_v38  ;;  %v1339_v41 = vld [vmem:[%s2267_s7] sm:$0xff] }
 0x1ef   :  { %1923 = vmatprep.subr.bf16.mxu1 %v1955_v38 }
 0x29b   :  { %v1873_v42 = vpop.f32.mrf.mxu0 }
 0x29c   :  { %v1879_v43 = vpop.f32.mrf.mxu1 }
 0x29d   :  { %v975_v44 = vpop.f32.mrf.mxu0 }
 0x29e   :  { %v1044_v45 = vpop.f32.mrf.mxu1 }
 0x29f   :  { %v1874_v46 = vpop.f32.mrf.mxu0 }
 0x2a0   :  { %v1880_v47 = vpop.f32.mrf.mxu1 }
 0x2a1   :  { %v978_v49 = vpop.f32.mrf.mxu0 }
 0x2a2   :  { %v1047_v50 = vpop.f32.mrf.mxu1 }
 0x2a3   :  { %v1885_v51 = vpop.f32.mrf.mxu0 }
 0x2a4   :  { %v1891_v52 = vpop.f32.mrf.mxu1  ;;  %v1108_v58 = vadd.f32 %v1885_v51, %v1873_v42 }
 0x2a5   :  { %v1099_v53 = vpop.f32.mrf.mxu0  ;;  %v1160_v60 = vadd.f32 %v1891_v52, %v1879_v43 }
 0x2a6   :  { %v1151_v54 = vpop.f32.mrf.mxu1  ;;  %v1100_v0 = vadd.f32 %v1099_v53, %v975_v44 }
 0x2a7   :  { %v1886_v55 = vpop.f32.mrf.mxu0  ;;  %v1152_v3 = vadd.f32 %v1151_v54, %v1044_v45  ;;  %v1726_v54 = vld [vmem:[%s2267_s7 + $0x20] sm:$0xff] }
 0x2a8   :  { %v1892_v56 = vpop.f32.mrf.mxu1  ;;  %v1727_v55 = vld [vmem:[%s2267_s7 + $0x28] sm:$0xff] }
 0x2a9   :  { %v1102_v57 = vpop.f32.mrf.mxu0  ;;  %v1547_v56 = vpack.c.bf16 %v1727_v55, %v1726_v54 }
 0x2aa   :  { %v1154_v59 = vpop.f32.mrf.mxu1  ;;  %v1103_v12 = vadd.f32 %v1102_v57, %v978_v49  ;;  %v1341_v49 = vpack.c.bf16 %v1340_v63, %v1339_v41 }
 0x2ab   :  { %v1897_v61 = vpop.f32.mrf.mxu0  ;;  %v1155_v17 = vadd.f32 %v1154_v59, %v1047_v50 }
 0x2ac   :  { %v1291_v1 = vadd.f32 %v1897_v61, %v1108_v58  ;;  %v1903_v2 = vpop.f32.mrf.mxu1 }
 0x2ad   :  { %v1294_v4 = vadd.f32 %v1903_v2, %v1160_v60  ;;  %v1216_v5 = vpop.f32.mrf.mxu0 }
 0x2ae   :  { %v1304_v6 = vadd.f32 %v1719_v62, %v1291_v1  ;;  %v1289_v8 = vadd.f32 %v1216_v5, %v1100_v0  ;;  %v1275_v9 = vpop.f32.mrf.mxu1 }
 0x2af   :  { %v1307_v48 = vadd.f32 %v1719_v62, %v1294_v4  ;;  %v1292_v10 = vadd.f32 %v1275_v9, %v1152_v3  ;;  %v1898_v11 = vpop.f32.mrf.mxu0 }
 0x2b0   :  { %v1310_v13 = vmax.f32 %v1304_v6, 0.0  ;;  %v1302_v15 = vadd.f32 %v1719_v62, %v1289_v8  ;;  %v1904_v16 = vpop.f32.mrf.mxu1 }
 0x2b1   :  { %v1313_v18 = vmax.f32 %v1307_v48, 0.0  ;;  %v1305_v19 = vadd.f32 %v1719_v62, %v1292_v10  ;;  %v1219_v20 = vpop.f32.mrf.mxu0 }
 0x2b2   :  { %v1290_v21 = vadd.f32 %v1219_v20, %v1103_v12  ;;  %v1278_v22 = vpop.f32.mrf.mxu1  ;;  %v1331_v23 = vsel %vm1319_vm14, %v1310_v13, 0.0  ;;  %v1308_v24 = vmax.f32 %v1302_v15, 0.0 }
 0x2b3   :  { %v1293_v25 = vadd.f32 %v1278_v22, %v1155_v17  ;;  %v1334_v26 = vsel %vm1319_vm14, %v1313_v18, 0.0  ;;  %v1311_v27 = vmax.f32 %v1305_v19, 0.0  ;;  %v1336_v30 = vpack.c.bf16 %v1331_v23, %v1331_v23  ;;  %v1730_v19 = vld [vmem:[%s2269_s8] ss:$0 sm:$0xff] }
 0x2b4   :  { %v1303_v28 = vadd.f32 %v1719_v62, %v1290_v21  ;;  %v1338_v7 = vpack.c.bf16 %v1334_v26, %v1334_v26  ;;  %v1329_v14 = vsel %vm1314_vm15, %v1308_v24, 0.0 }
 0x2b5   :  { %v1306_v29 = vadd.f32 %v1719_v62, %v1293_v25  ;;  %v1332_v33 = vsel %vm1314_vm15, %v1311_v27, 0.0  ;;  %v1354_v36 = vshll.u32 %v1336_v30, 16  ;;  %v1551_v59 = vrot.slane %v1336_v30, 1 }
 0x2b6   :  { %v1309_v31 = vmax.f32 %v1303_v28, 0.0  ;;  %v1410_v39 = vshll.u32 %v1338_v7, 16  ;;  %v1600_v60 = vrot.slane %v1338_v7, 1 }
 0x2b7   :  { %v1312_v32 = vmax.f32 %v1306_v29, 0.0  ;;  %v1356_v46 = vrot.slane %v1354_v36, 1 }
 0x2b8   :  { %v1335_v34 = vpack.c.bf16 %v1309_v31, %v1329_v14  ;;  %v1412_v50 = vrot.slane %v1410_v39, 1 }
 0x2b9   :  { %v1337_v35 = vpack.c.bf16 %v1312_v32, %v1332_v33 }
 0x2ba   :  { %v1349_v37 = vshll.u32 %v1335_v34, 16  ;;  %v1347_v42 = vshrl.u32 %v1335_v34, 16  ;;  %v1550_v57 = vrot.slane %v1335_v34, 1 }
 0x2bb   :  { %v1405_v40 = vshll.u32 %v1337_v35, 16  ;;  %v1403_v44 = vshrl.u32 %v1337_v35, 16  ;;  %v1599_v58 = vrot.slane %v1337_v35, 1 }
 0x2bc   :  { %v1351_v43 = vrot.slane %v1349_v37, 1  ;;  %v1552_v61 = vsel %vm306_vm3, %v1550_v57, %v1551_v59 }
 0x2bd   :  { %v1407_v45 = vrot.slane %v1405_v40, 1  ;;  %v1601_v62 = vsel %vm306_vm3, %v1599_v58, %v1600_v60 }
 0x2be   :  { %v1352_v47 = vor.u32 %v1351_v43, %v1347_v42 }
 0x2bf   :  { %v1408_v51 = vor.u32 %v1407_v45, %v1403_v44 }
 0x2c0   :  { %v1357_v52 = vsel %vm50_vm1, %v1352_v47, %v1356_v46 }
 0x2c1   :  { %1908 = vmatmul.mubr.msk.bf16.vlgmr.msra.gmra.mxu0 %vm502_vm6, %v1357_v52  ;;  %v1413_v53 = vsel %vm50_vm1, %v1408_v51, %v1412_v50 }
 0x2c2   :  { %1914 = vmatmul.mubr.msk.bf16.vlgmr.msra.gmra.mxu1 %vm502_vm6, %v1413_v53  ;;  %1918 = vmatpush3.bf16.msra.mxu0 %v1341_v49 }
 0x2c3   :  { %1924 = vmatpush3.bf16.msra.mxu1 %v1341_v49  ;;  %1919 = vmatprep.mubr.msk.bf16.mxu0 %vm1956_vm13, %v1955_v38 }
 0x2c4   :  { %1925 = vmatprep.mubr.msk.bf16.mxu1 %vm1956_vm13, %v1955_v38  ;;  %1929 = vmatprep.subr.bf16.mxu0 %v1955_v38 }
 0x2c5   :  { %1935 = vmatprep.subr.bf16.mxu1 %v1955_v38 }
 0x2c9   :  { %1920 = vmatmul.mubr.msk.bf16.vlgmr.msra.gmra.mxu0 %vm502_vm6, %v1335_v34 }
 0x2ca   :  { %1926 = vmatmul.mubr.msk.bf16.vlgmr.msra.gmra.mxu1 %vm502_vm6, %v1337_v35  ;;  %1930 = vmatpush3.bf16.msra.mxu0 %v1547_v56 }
 0x2cb   :  { %1936 = vmatpush3.bf16.msra.mxu1 %v1547_v56  ;;  %1931 = vmatprep.mubr.msk.bf16.mxu0 %vm1956_vm13, %v1955_v38 }
 0x2cc   :  { %1937 = vmatprep.mubr.msk.bf16.mxu1 %vm1956_vm13, %v1955_v38 }
 0x2d1   :  { %1932 = vmatmul.mubr.msk.bf16.vlgmr.msra.gmra.mxu0 %vm502_vm6, %v1552_v61 }
 0x2d2   :  { %1938 = vmatmul.mubr.msk.bf16.vlgmr.msra.gmra.mxu1 %vm502_vm6, %v1601_v62 }
 0x381   :  { %v1395_v0 = vpop.f32.mrf.mxu0 }
 0x382   :  { %v1451_v1 = vpop.f32.mrf.mxu1 }
 0x383   :  { %v1909_v2 = vpop.f32.mrf.mxu0 }
 0x384   :  { %v1915_v3 = vpop.f32.mrf.mxu1 }
 0x385   :  { %v1398_v4 = vpop.f32.mrf.mxu0 }
 0x386   :  { %v1454_v5 = vpop.f32.mrf.mxu1 }
 0x387   :  { %v1910_v6 = vpop.f32.mrf.mxu0 }
 0x388   :  { %v1916_v38 = vpop.f32.mrf.mxu1 }
 0x389   :  { %v1494_v8 = vpop.f32.mrf.mxu0 }
 0x38a   :  { %v1537_v9 = vpop.f32.mrf.mxu1  ;;  %v1495_v15 = vadd.f32 %v1494_v8, %v1395_v0 }
 0x38b   :  { %v1921_v48 = vpop.f32.mrf.mxu0  ;;  %v1538_v17 = vadd.f32 %v1537_v9, %v1451_v1 }
 0x38c   :  { %v1927_v10 = vpop.f32.mrf.mxu1 }
 0x38d   :  { %v1497_v11 = vpop.f32.mrf.mxu0 }
 0x38e   :  { %v1540_v12 = vpop.f32.mrf.mxu1  ;;  %v1498_v24 = vadd.f32 %v1497_v11, %v1398_v4 }
 0x38f   :  { %v1922_v13 = vpop.f32.mrf.mxu0  ;;  %v1541_v27 = vadd.f32 %v1540_v12, %v1454_v5 }
 0x390   :  { %v1928_v16 = vpop.f32.mrf.mxu1 }
 0x391   :  { %v1590_v18 = vpop.f32.mrf.mxu0 }
 0x392   :  { %v1646_v20 = vadd.f32 %v1590_v18, %v1495_v15  ;;  %v1639_v21 = vpop.f32.mrf.mxu1 }
 0x393   :  { %v1648_v22 = vadd.f32 %v1639_v21, %v1538_v17  ;;  %v1933_v23 = vpop.f32.mrf.mxu0 }
 0x394   :  { %v1657_v25 = vadd.f32 %v1730_v19, %v1646_v20  ;;  %v1939_v26 = vpop.f32.mrf.mxu1 }
 0x395   :  { %v1659_v28 = vadd.f32 %v1730_v19, %v1648_v22  ;;  %v1593_v29 = vpop.f32.mrf.mxu0 }
 0x396   :  { %1661 = vst.msk [vmem:[%s2270_s10] sm:$0xff] %vm66_vm2, %v1657_v25  ;;  %v1647_v30 = vadd.f32 %v1593_v29, %v1498_v24  ;;  %v1642_v31 = vpop.f32.mrf.mxu1 }
 0x397   :  { %1663 = vst.msk [vmem:[%s2270_s10 + $0x10] sm:$0xff] %vm66_vm2, %v1659_v28  ;;  %v1649_v7 = vadd.f32 %v1642_v31, %v1541_v27  ;;  %v1934_v14 = vpop.f32.mrf.mxu0 }
 0x398   :  { %v1658_v32 = vadd.f32 %v1730_v19, %v1647_v30  ;;  %v1940_v33 = vpop.f32.mrf.mxu1 }
 0x399   :  { %v1660_v34 = vadd.f32 %v1730_v19, %v1649_v7 }
 0x39a   :  { %1662 = vst.msk [vmem:[%s2270_s10 + $0x8] sm:$0xff] %vm66_vm2, %v1658_v32 }
 0x39b   :  { %1664 = vst.msk [vmem:[%s2270_s10 + $0x18] sm:$0xff] %vm66_vm2, %v1660_v34 }

</bundles_post_ra>
